<compile_context>
chip_gen: v5e
topology: v5e:2x2
jax: 0.10.0
libtpu: 0.0.40
codegen_flags: <defaults>
</compile_context>

<pallas_src>
import jax
import jax.numpy as jnp
import numpy as np
from jax import lax
from jax.experimental import pallas as pl
from jax.experimental.pallas import tpu as pltpu


def encoder_seq_kernel(tok_ref,   # (T, 1)  int32 token ids
                       emb_ref,   # (V, H)  f32 embedding table (VMEM resident)
                       wih1_ref,  # (H, 4H) layer-1 input->gates (torch W_ih^T, g-cols x2)
                       whh1_ref,  # (H, 4H) layer-1 hidden->gates
                       wih2_ref,  # (H, 4H) layer-2 input->gates
                       whh2_ref,  # (H, 4H) layer-2 hidden->gates
                       b1_ref,    # (1, 4H) b_ih + b_hh, layer 1 (g-cols x2)
                       b2_ref,    # (1, 4H) b_ih + b_hh, layer 2 (g-cols x2)
                       h0_ref,    # (2, 1, H) initial hidden
                       c0_ref,    # (2, 1, H) initial cell
                       out_ref,   # (1, T*H)  lane-dense per-step top-layer outputs
                       hN_ref,    # (2, 1, H) final hidden
                       cN_ref):   # (2, 1, H) final cell
    T = tok_ref.shape[0]
    V, H = emb_ref.shape
    G = 4 * H

    # ---- hoisted loop invariants -------------------------------------------------------
    wih1 = wih1_ref[...]
    whh1 = whh1_ref[...]
    wih2 = wih2_ref[...]
    whh2 = whh2_ref[...]
    b1 = b1_ref[...]
    b2 = b2_ref[...]

    # One sigmoid over all 4H gate lanes per layer; tanh(g) recovered as 2*sigmoid(2g)-1
    # (g-columns of W/b pre-scaled by 2 in pack_params). mul+add instead of a select.
    col = lax.broadcasted_iota(jnp.int32, (1, G), 1)
    is_g = (col >= 2 * H) & (col < 3 * H)
    gate_scale = jnp.where(is_g, 2.0, 1.0).astype(jnp.float32)
    gate_shift = jnp.where(is_g, -1.0, 0.0).astype(jnp.float32)

    def lstm_cell(gates, c_prev):
        s = jax.nn.sigmoid(gates)                  # single EUP pass over (1, 4H)
        a = s * gate_scale + gate_shift            # i,f,o = sigmoid ; g = tanh
        i_g = a[:, 0 * H:1 * H]
        f_g = a[:, 1 * H:2 * H]
        g_g = a[:, 2 * H:3 * H]
        o_g = a[:, 3 * H:4 * H]
        c_new = f_g * c_prev + i_g * g_g
        h_new = o_g * jnp.tanh(c_new)
        return h_new, c_new

    # ---- embedding gather for the whole sequence as a one-hot matmul (no per-step DMA,
    # ---- no dynamic indexing), plus the layer-1 input path precomputed in one matmul ----
    tok = tok_ref[...]                                          # (T, 1) int32
    vocab_iota = lax.broadcasted_iota(jnp.int32, (T, V), 1)     # (T, V)
    onehot = jnp.where(vocab_iota == tok, 1.0, 0.0).astype(jnp.float32)
    x_seq = jnp.dot(onehot, emb_ref[...],
                    preferred_element_type=jnp.float32)         # (T, H) gathered rows
    xg = jnp.dot(x_seq, wih1, preferred_element_type=jnp.float32) + b1     # (T, 4H)

    # ---- unrolled time loop; state carried in vregs -------------------------------------
    h1 = h0_ref[0]
    h2 = h0_ref[1]
    c1 = c0_ref[0]
    c2 = c0_ref[1]
    for t in range(T):
        # layer-2's hidden-path matmul is independent of layer-1's output: issue it first
        g2h = jnp.dot(h2, whh2, preferred_element_type=jnp.float32) + b2
        g1 = xg[t:t + 1, :] + jnp.dot(h1, whh1, preferred_element_type=jnp.float32)
        h1, c1 = lstm_cell(g1, c1)
        g2 = g2h + jnp.dot(h1, wih2, preferred_element_type=jnp.float32)
        h2, c2 = lstm_cell(g2, c2)
        out_ref[0:1, t * H:(t + 1) * H] = h2    # lane-dense slab, one HBM writeback at the end

    hN_ref[0] = h1
    hN_ref[1] = h2
    cN_ref[0] = c1
    cN_ref[1] = c2


def pack_params(params):
    """Torch-layout params -> kernel layout (transposed, g-columns pre-scaled by 2)."""
    emb_w, layers = params
    V, H = emb_w.shape
    g_scale = jnp.concatenate([jnp.ones((2 * H,), jnp.float32),
                               2.0 * jnp.ones((H,), jnp.float32),
                               jnp.ones((H,), jnp.float32)])
    packed = []
    for (w_ih, w_hh, b_ih, b_hh) in layers:
        packed.append((jnp.asarray(w_ih).T * g_scale,                      # (H, 4H)
                       jnp.asarray(w_hh).T * g_scale,                      # (H, 4H)
                       ((b_ih + b_hh) * g_scale).reshape(1, 4 * H)))       # (1, 4H)
    return jnp.asarray(emb_w, jnp.float32), packed


def encoder_lstm_forward(tokens, hidden, params):
    """Run the 2-layer EncoderLSTM over a whole token sequence in ONE pallas_call.

    Equivalent to calling the torch module once per token with the carried hidden state.
    Returns (outputs (T,1,H), (h_final (2,1,H), c_final (2,1,H))).
    """
    emb, packed = pack_params(params)
    (wih1, whh1, b1), (wih2, whh2, b2) = packed
    h0, c0 = hidden
    V, H = emb.shape
    T = tokens.shape[0]

    tok2d = tokens.astype(jnp.int32).reshape(T, 1)
    vspec = pl.BlockSpec(memory_space=pltpu.MemorySpace.VMEM)

    out_flat, h_fin, c_fin = pl.pallas_call(
        encoder_seq_kernel,
        out_shape=(
            jax.ShapeDtypeStruct((1, T * H), jnp.float32),     # lane-dense outputs
            jax.ShapeDtypeStruct((2, 1, H), jnp.float32),      # final h
            jax.ShapeDtypeStruct((2, 1, H), jnp.float32),      # final c
        ),
        in_specs=[vspec] * 10,
        out_specs=(vspec, vspec, vspec),
    )(tok2d, emb, wih1, whh1, wih2, whh2, b1, b2, h0, c0)

    outs = out_flat.reshape(T, 1, H)
    return outs, (h_fin, c_fin)
    # TODO(synk): batch several sequences (B>=8) to fill vreg sublanes / second TensorCore on
    # v7x; the original module is strictly batch-1 so this is left as the single-sequence form.


def make_params(input_size, hidden_size, key):
    """Deterministic torch-style init (Embedding ~ N(0,1); LSTM ~ U(-1/sqrt(H), 1/sqrt(H)))."""
    H = hidden_size
    k = 1.0 / np.sqrt(H)
    keys = jax.random.split(key, 9)
    u = lambda kk, shape: jax.random.uniform(kk, shape, jnp.float32, -k, k)

    emb_w = jax.random.normal(keys[0], (input_size, H), jnp.float32)
    layers = []
    for layer in range(2):
        base = 1 + 4 * layer
        w_ih = u(keys[base + 0], (4 * H, H))         # torch layout (4H, H)
        w_hh = u(keys[base + 1], (4 * H, H))
        b_ih = u(keys[base + 2], (4 * H,))
        b_hh = u(keys[base + 3], (4 * H,))
        layers.append((w_ih, w_hh, b_ih, b_hh))
    return emb_w, layers


def reference_forward(tokens, hidden, params):
    """Pure-JAX per-token loop matching torch EncoderLSTM.forward semantics exactly."""
    emb_w, layers = params
    H = emb_w.shape[1]
    h0, c0 = hidden
    h = [h0[0], h0[1]]
    c = [c0[0], c0[1]]
    outs = []
    for tok in np.asarray(tokens):
        x = emb_w[int(tok)].reshape(1, H)
        for layer in range(2):
            w_ih, w_hh, b_ih, b_hh = layers[layer]
            gates = x @ w_ih.T + h[layer] @ w_hh.T + b_ih + b_hh
            i_g = jax.nn.sigmoid(gates[:, 0 * H:1 * H])
            f_g = jax.nn.sigmoid(gates[:, 1 * H:2 * H])
            g_g = jnp.tanh(gates[:, 2 * H:3 * H])
            o_g = jax.nn.sigmoid(gates[:, 3 * H:4 * H])
            c[layer] = f_g * c[layer] + i_g * g_g
            h[layer] = o_g * jnp.tanh(c[layer])
            x = h[layer]
        outs.append(x)
    return jnp.stack(outs), (jnp.stack(h), jnp.stack(c))


if __name__ == "__main__":
    INPUT_SIZE = 50   # vocab size
    HIDDEN = 32
    SEQ_LEN = 8

    key = jax.random.PRNGKey(0)
    params = make_params(INPUT_SIZE, HIDDEN, key)

    tokens = jax.random.randint(jax.random.fold_in(key, 123), (SEQ_LEN,), 0, INPUT_SIZE,
                                dtype=jnp.int32)
    hidden = (jnp.zeros((2, 1, HIDDEN), jnp.float32),        # initHidden()
              jnp.zeros((2, 1, HIDDEN), jnp.float32))

    outs, (h_fin, c_fin) = encoder_lstm_forward(tokens, hidden, params)
    jax.block_until_ready((outs, h_fin, c_fin))

    ref_outs, (ref_h, ref_c) = reference_forward(tokens, hidden, params)
    assert outs.shape == (SEQ_LEN, 1, HIDDEN)
    assert h_fin.shape == (2, 1, HIDDEN) and c_fin.shape == (2, 1, HIDDEN)
    np.testing.assert_allclose(np.asarray(outs), np.asarray(ref_outs), rtol=1e-3, atol=1e-3)
    np.testing.assert_allclose(np.asarray(h_fin), np.asarray(ref_h), rtol=1e-3, atol=1e-3)
    np.testing.assert_allclose(np.asarray(c_fin), np.asarray(ref_c), rtol=1e-3, atol=1e-3)

    print("KERNEL_OK")
</pallas_src>

<mosaic_0001>
module attributes {stable_mosaic.version = 11 : i64} {
  func.func @encoder_seq_kernel(%arg0: memref<8x1xi32, #tpu.memory_space<vmem>>, %arg1: memref<50x32xf32, #tpu.memory_space<vmem>>, %arg2: memref<32x128xf32, #tpu.memory_space<vmem>>, %arg3: memref<32x128xf32, #tpu.memory_space<vmem>>, %arg4: memref<32x128xf32, #tpu.memory_space<vmem>>, %arg5: memref<32x128xf32, #tpu.memory_space<vmem>>, %arg6: memref<1x128xf32, #tpu.memory_space<vmem>>, %arg7: memref<1x128xf32, #tpu.memory_space<vmem>>, %arg8: memref<2x1x32xf32, #tpu.memory_space<vmem>>, %arg9: memref<2x1x32xf32, #tpu.memory_space<vmem>>, %arg10: memref<1x256xf32, #tpu.memory_space<vmem>>, %arg11: memref<2x1x32xf32, #tpu.memory_space<vmem>>, %arg12: memref<2x1x32xf32, #tpu.memory_space<vmem>>) attributes {dimension_semantics = [], scalar_prefetch = 0 : i64, scratch_operands = 0 : i64, tpu.core_type = #tpu.core_type<tc>} {
    %c0 = arith.constant 0 : index
    %c0_0 = arith.constant 0 : index
    %0 = vector.load %arg2[%c0, %c0_0] : memref<32x128xf32, #tpu.memory_space<vmem>>, vector<32x128xf32>
    %c0_1 = arith.constant 0 : index
    %c0_2 = arith.constant 0 : index
    %1 = vector.load %arg3[%c0_1, %c0_2] : memref<32x128xf32, #tpu.memory_space<vmem>>, vector<32x128xf32>
    %c0_3 = arith.constant 0 : index
    %c0_4 = arith.constant 0 : index
    %2 = vector.load %arg4[%c0_3, %c0_4] : memref<32x128xf32, #tpu.memory_space<vmem>>, vector<32x128xf32>
    %c0_5 = arith.constant 0 : index
    %c0_6 = arith.constant 0 : index
    %3 = vector.load %arg5[%c0_5, %c0_6] : memref<32x128xf32, #tpu.memory_space<vmem>>, vector<32x128xf32>
    %c0_7 = arith.constant 0 : index
    %c0_8 = arith.constant 0 : index
    %4 = vector.load %arg6[%c0_7, %c0_8] : memref<1x128xf32, #tpu.memory_space<vmem>>, vector<1x128xf32>
    %c0_9 = arith.constant 0 : index
    %c0_10 = arith.constant 0 : index
    %5 = vector.load %arg7[%c0_9, %c0_10] : memref<1x128xf32, #tpu.memory_space<vmem>>, vector<1x128xf32>
    %6 = tpu.iota {dimensions = array<i32: 1>} : vector<1x128xi32>
    %c64_i32 = arith.constant 64 : i32
    %7 = vector.broadcast %c64_i32 : i32 to vector<1x128xi32>
    %8 = arith.cmpi sge, %6, %7 : vector<1x128xi32>
    %c96_i32 = arith.constant 96 : i32
    %9 = vector.broadcast %c96_i32 : i32 to vector<1x128xi32>
    %10 = arith.cmpi slt, %6, %9 : vector<1x128xi32>
    %11 = arith.andi %8, %10 : vector<1x128xi1>
    %cst = arith.constant 2.000000e+00 : f32
    %cst_11 = arith.constant 1.000000e+00 : f32
    %12 = vector.broadcast %cst : f32 to vector<1x128xf32>
    %13 = vector.broadcast %cst_11 : f32 to vector<1x128xf32>
    %14 = arith.select %11, %12, %13 : vector<1x128xi1>, vector<1x128xf32>
    %cst_12 = arith.constant -1.000000e+00 : f32
    %cst_13 = arith.constant 0.000000e+00 : f32
    %15 = vector.broadcast %cst_12 : f32 to vector<1x128xf32>
    %16 = vector.broadcast %cst_13 : f32 to vector<1x128xf32>
    %17 = arith.select %11, %15, %16 : vector<1x128xi1>, vector<1x128xf32>
    %c0_14 = arith.constant 0 : index
    %c0_15 = arith.constant 0 : index
    %18 = vector.load %arg0[%c0_14, %c0_15] : memref<8x1xi32, #tpu.memory_space<vmem>>, vector<8x1xi32>
    %19 = tpu.iota {dimensions = array<i32: 1>} : vector<8x50xi32>
    %20 = vector.broadcast %18 : vector<8x1xi32> to vector<8x50xi32>
    %21 = arith.cmpi eq, %19, %20 : vector<8x50xi32>
    %cst_16 = arith.constant 1.000000e+00 : f32
    %cst_17 = arith.constant 0.000000e+00 : f32
    %22 = vector.broadcast %cst_16 : f32 to vector<8x50xf32>
    %23 = vector.broadcast %cst_17 : f32 to vector<8x50xf32>
    %24 = arith.select %21, %22, %23 : vector<8x50xi1>, vector<8x50xf32>
    %c0_18 = arith.constant 0 : index
    %c0_19 = arith.constant 0 : index
    %25 = vector.load %arg1[%c0_18, %c0_19] : memref<50x32xf32, #tpu.memory_space<vmem>>, vector<50x32xf32>
    %cst_20 = arith.constant dense<0.000000e+00> : vector<8x32xf32>
    %26 = tpu.matmul %24, %25, %cst_20 {dimension_numbers = #tpu.dot_dimension_numbers<[1], [0], [0], [1], [0, 0, 1, 1], [], []>} : vector<8x50xf32>, vector<50x32xf32>, vector<8x32xf32> -> vector<8x32xf32>
    %cst_21 = arith.constant dense<0.000000e+00> : vector<8x128xf32>
    %27 = tpu.matmul %26, %0, %cst_21 {dimension_numbers = #tpu.dot_dimension_numbers<[1], [0], [0], [1], [0, 0, 1, 1], [], []>} : vector<8x32xf32>, vector<32x128xf32>, vector<8x128xf32> -> vector<8x128xf32>
    %28 = vector.broadcast %4 : vector<1x128xf32> to vector<8x128xf32>
    %29 = arith.addf %27, %28 : vector<8x128xf32>
    %c0_22 = arith.constant 0 : index
    %c0_23 = arith.constant 0 : index
    %c0_24 = arith.constant 0 : index
    %30 = vector.load %arg8[%c0_22, %c0_23, %c0_24] : memref<2x1x32xf32, #tpu.memory_space<vmem>>, vector<1x1x32xf32>
    %31 = vector.shape_cast %30 : vector<1x1x32xf32> to vector<1x32xf32>
    %c1 = arith.constant 1 : index
    %c0_25 = arith.constant 0 : index
    %c0_26 = arith.constant 0 : index
    %32 = vector.load %arg8[%c1, %c0_25, %c0_26] : memref<2x1x32xf32, #tpu.memory_space<vmem>>, vector<1x1x32xf32>
    %33 = vector.shape_cast %32 : vector<1x1x32xf32> to vector<1x32xf32>
    %c0_27 = arith.constant 0 : index
    %c0_28 = arith.constant 0 : index
    %c0_29 = arith.constant 0 : index
    %34 = vector.load %arg9[%c0_27, %c0_28, %c0_29] : memref<2x1x32xf32, #tpu.memory_space<vmem>>, vector<1x1x32xf32>
    %35 = vector.shape_cast %34 : vector<1x1x32xf32> to vector<1x32xf32>
    %c1_30 = arith.constant 1 : index
    %c0_31 = arith.constant 0 : index
    %c0_32 = arith.constant 0 : index
    %36 = vector.load %arg9[%c1_30, %c0_31, %c0_32] : memref<2x1x32xf32, #tpu.memory_space<vmem>>, vector<1x1x32xf32>
    %37 = vector.shape_cast %36 : vector<1x1x32xf32> to vector<1x32xf32>
    %cst_33 = arith.constant dense<0.000000e+00> : vector<1x128xf32>
    %38 = tpu.matmul %33, %3, %cst_33 {dimension_numbers = #tpu.dot_dimension_numbers<[1], [0], [0], [1], [0, 0, 1, 1], [], []>} : vector<1x32xf32>, vector<32x128xf32>, vector<1x128xf32> -> vector<1x128xf32>
    %39 = arith.addf %38, %5 : vector<1x128xf32>
    %40 = vector.extract_strided_slice %29 {offsets = [0, 0], sizes = [1, 128], strides = [1, 1]} : vector<8x128xf32> to vector<1x128xf32>
    %cst_34 = arith.constant dense<0.000000e+00> : vector<1x128xf32>
    %41 = tpu.matmul %31, %1, %cst_34 {dimension_numbers = #tpu.dot_dimension_numbers<[1], [0], [0], [1], [0, 0, 1, 1], [], []>} : vector<1x32xf32>, vector<32x128xf32>, vector<1x128xf32> -> vector<1x128xf32>
    %42 = arith.addf %40, %41 : vector<1x128xf32>
    %43 = arith.negf %42 : vector<1x128xf32>
    %44 = math.exp %43 : vector<1x128xf32>
    %cst_35 = arith.constant 1.000000e+00 : f32
    %45 = vector.broadcast %cst_35 : f32 to vector<1x128xf32>
    %46 = arith.addf %45, %44 : vector<1x128xf32>
    %47 = arith.divf %45, %46 : vector<1x128xf32>
    %48 = arith.mulf %47, %14 : vector<1x128xf32>
    %49 = arith.addf %48, %17 : vector<1x128xf32>
    %50 = vector.extract_strided_slice %49 {offsets = [0, 0], sizes = [1, 32], strides = [1, 1]} : vector<1x128xf32> to vector<1x32xf32>
    %51 = vector.extract_strided_slice %49 {offsets = [0, 32], sizes = [1, 32], strides = [1, 1]} : vector<1x128xf32> to vector<1x32xf32>
    %52 = vector.extract_strided_slice %49 {offsets = [0, 64], sizes = [1, 32], strides = [1, 1]} : vector<1x128xf32> to vector<1x32xf32>
    %53 = vector.extract_strided_slice %49 {offsets = [0, 96], sizes = [1, 32], strides = [1, 1]} : vector<1x128xf32> to vector<1x32xf32>
    %54 = arith.mulf %51, %35 : vector<1x32xf32>
    %55 = arith.mulf %50, %52 : vector<1x32xf32>
    %56 = arith.addf %54, %55 : vector<1x32xf32>
    %57 = math.tanh %56 : vector<1x32xf32>
    %58 = arith.mulf %53, %57 : vector<1x32xf32>
    %cst_36 = arith.constant dense<0.000000e+00> : vector<1x128xf32>
    %59 = tpu.matmul %58, %2, %cst_36 {dimension_numbers = #tpu.dot_dimension_numbers<[1], [0], [0], [1], [0, 0, 1, 1], [], []>} : vector<1x32xf32>, vector<32x128xf32>, vector<1x128xf32> -> vector<1x128xf32>
    %60 = arith.addf %39, %59 : vector<1x128xf32>
    %61 = arith.negf %60 : vector<1x128xf32>
    %62 = math.exp %61 : vector<1x128xf32>
    %cst_37 = arith.constant 1.000000e+00 : f32
    %63 = vector.broadcast %cst_37 : f32 to vector<1x128xf32>
    %64 = arith.addf %63, %62 : vector<1x128xf32>
    %65 = arith.divf %63, %64 : vector<1x128xf32>
    %66 = arith.mulf %65, %14 : vector<1x128xf32>
    %67 = arith.addf %66, %17 : vector<1x128xf32>
    %68 = vector.extract_strided_slice %67 {offsets = [0, 0], sizes = [1, 32], strides = [1, 1]} : vector<1x128xf32> to vector<1x32xf32>
    %69 = vector.extract_strided_slice %67 {offsets = [0, 32], sizes = [1, 32], strides = [1, 1]} : vector<1x128xf32> to vector<1x32xf32>
    %70 = vector.extract_strided_slice %67 {offsets = [0, 64], sizes = [1, 32], strides = [1, 1]} : vector<1x128xf32> to vector<1x32xf32>
    %71 = vector.extract_strided_slice %67 {offsets = [0, 96], sizes = [1, 32], strides = [1, 1]} : vector<1x128xf32> to vector<1x32xf32>
    %72 = arith.mulf %69, %37 : vector<1x32xf32>
    %73 = arith.mulf %68, %70 : vector<1x32xf32>
    %74 = arith.addf %72, %73 : vector<1x32xf32>
    %75 = math.tanh %74 : vector<1x32xf32>
    %76 = arith.mulf %71, %75 : vector<1x32xf32>
    %c0_38 = arith.constant 0 : index
    %c0_39 = arith.constant 0 : index
    %77 = vector.load %arg10[%c0_38, %c0_39] : memref<1x256xf32, #tpu.memory_space<vmem>>, vector<1x32xf32>
    tpu.vector_store %arg10[%c0_38, %c0_39], %76 {strides = array<i32>} : memref<1x256xf32, #tpu.memory_space<vmem>>, vector<1x32xf32>,
    %cst_40 = arith.constant dense<0.000000e+00> : vector<1x128xf32>
    %78 = tpu.matmul %76, %3, %cst_40 {dimension_numbers = #tpu.dot_dimension_numbers<[1], [0], [0], [1], [0, 0, 1, 1], [], []>} : vector<1x32xf32>, vector<32x128xf32>, vector<1x128xf32> -> vector<1x128xf32>
    %79 = arith.addf %78, %5 : vector<1x128xf32>
    %80 = vector.extract_strided_slice %29 {offsets = [1, 0], sizes = [1, 128], strides = [1, 1]} : vector<8x128xf32> to vector<1x128xf32>
    %cst_41 = arith.constant dense<0.000000e+00> : vector<1x128xf32>
    %81 = tpu.matmul %58, %1, %cst_41 {dimension_numbers = #tpu.dot_dimension_numbers<[1], [0], [0], [1], [0, 0, 1, 1], [], []>} : vector<1x32xf32>, vector<32x128xf32>, vector<1x128xf32> -> vector<1x128xf32>
    %82 = arith.addf %80, %81 : vector<1x128xf32>
    %83 = arith.negf %82 : vector<1x128xf32>
    %84 = math.exp %83 : vector<1x128xf32>
    %cst_42 = arith.constant 1.000000e+00 : f32
    %85 = vector.broadcast %cst_42 : f32 to vector<1x128xf32>
    %86 = arith.addf %85, %84 : vector<1x128xf32>
    %87 = arith.divf %85, %86 : vector<1x128xf32>
    %88 = arith.mulf %87, %14 : vector<1x128xf32>
    %89 = arith.addf %88, %17 : vector<1x128xf32>
    %90 = vector.extract_strided_slice %89 {offsets = [0, 0], sizes = [1, 32], strides = [1, 1]} : vector<1x128xf32> to vector<1x32xf32>
    %91 = vector.extract_strided_slice %89 {offsets = [0, 32], sizes = [1, 32], strides = [1, 1]} : vector<1x128xf32> to vector<1x32xf32>
    %92 = vector.extract_strided_slice %89 {offsets = [0, 64], sizes = [1, 32], strides = [1, 1]} : vector<1x128xf32> to vector<1x32xf32>
    %93 = vector.extract_strided_slice %89 {offsets = [0, 96], sizes = [1, 32], strides = [1, 1]} : vector<1x128xf32> to vector<1x32xf32>
    %94 = arith.mulf %91, %56 : vector<1x32xf32>
    %95 = arith.mulf %90, %92 : vector<1x32xf32>
    %96 = arith.addf %94, %95 : vector<1x32xf32>
    %97 = math.tanh %96 : vector<1x32xf32>
    %98 = arith.mulf %93, %97 : vector<1x32xf32>
    %cst_43 = arith.constant dense<0.000000e+00> : vector<1x128xf32>
    %99 = tpu.matmul %98, %2, %cst_43 {dimension_numbers = #tpu.dot_dimension_numbers<[1], [0], [0], [1], [0, 0, 1, 1], [], []>} : vector<1x32xf32>, vector<32x128xf32>, vector<1x128xf32> -> vector<1x128xf32>
    %100 = arith.addf %79, %99 : vector<1x128xf32>
    %101 = arith.negf %100 : vector<1x128xf32>
    %102 = math.exp %101 : vector<1x128xf32>
    %cst_44 = arith.constant 1.000000e+00 : f32
    %103 = vector.broadcast %cst_44 : f32 to vector<1x128xf32>
    %104 = arith.addf %103, %102 : vector<1x128xf32>
    %105 = arith.divf %103, %104 : vector<1x128xf32>
    %106 = arith.mulf %105, %14 : vector<1x128xf32>
    %107 = arith.addf %106, %17 : vector<1x128xf32>
    %108 = vector.extract_strided_slice %107 {offsets = [0, 0], sizes = [1, 32], strides = [1, 1]} : vector<1x128xf32> to vector<1x32xf32>
    %109 = vector.extract_strided_slice %107 {offsets = [0, 32], sizes = [1, 32], strides = [1, 1]} : vector<1x128xf32> to vector<1x32xf32>
    %110 = vector.extract_strided_slice %107 {offsets = [0, 64], sizes = [1, 32], strides = [1, 1]} : vector<1x128xf32> to vector<1x32xf32>
    %111 = vector.extract_strided_slice %107 {offsets = [0, 96], sizes = [1, 32], strides = [1, 1]} : vector<1x128xf32> to vector<1x32xf32>
    %112 = arith.mulf %109, %74 : vector<1x32xf32>
    %113 = arith.mulf %108, %110 : vector<1x32xf32>
    %114 = arith.addf %112, %113 : vector<1x32xf32>
    %115 = math.tanh %114 : vector<1x32xf32>
    %116 = arith.mulf %111, %115 : vector<1x32xf32>
    %c0_45 = arith.constant 0 : index
    %c32 = arith.constant 32 : index
    %117 = vector.load %arg10[%c0_45, %c32] : memref<1x256xf32, #tpu.memory_space<vmem>>, vector<1x32xf32>
    tpu.vector_store %arg10[%c0_45, %c32], %116 {strides = array<i32>} : memref<1x256xf32, #tpu.memory_space<vmem>>, vector<1x32xf32>,
    %cst_46 = arith.constant dense<0.000000e+00> : vector<1x128xf32>
    %118 = tpu.matmul %116, %3, %cst_46 {dimension_numbers = #tpu.dot_dimension_numbers<[1], [0], [0], [1], [0, 0, 1, 1], [], []>} : vector<1x32xf32>, vector<32x128xf32>, vector<1x128xf32> -> vector<1x128xf32>
    %119 = arith.addf %118, %5 : vector<1x128xf32>
    %120 = vector.extract_strided_slice %29 {offsets = [2, 0], sizes = [1, 128], strides = [1, 1]} : vector<8x128xf32> to vector<1x128xf32>
    %cst_47 = arith.constant dense<0.000000e+00> : vector<1x128xf32>
    %121 = tpu.matmul %98, %1, %cst_47 {dimension_numbers = #tpu.dot_dimension_numbers<[1], [0], [0], [1], [0, 0, 1, 1], [], []>} : vector<1x32xf32>, vector<32x128xf32>, vector<1x128xf32> -> vector<1x128xf32>
    %122 = arith.addf %120, %121 : vector<1x128xf32>
    %123 = arith.negf %122 : vector<1x128xf32>
    %124 = math.exp %123 : vector<1x128xf32>
    %cst_48 = arith.constant 1.000000e+00 : f32
    %125 = vector.broadcast %cst_48 : f32 to vector<1x128xf32>
    %126 = arith.addf %125, %124 : vector<1x128xf32>
    %127 = arith.divf %125, %126 : vector<1x128xf32>
    %128 = arith.mulf %127, %14 : vector<1x128xf32>
    %129 = arith.addf %128, %17 : vector<1x128xf32>
    %130 = vector.extract_strided_slice %129 {offsets = [0, 0], sizes = [1, 32], strides = [1, 1]} : vector<1x128xf32> to vector<1x32xf32>
    %131 = vector.extract_strided_slice %129 {offsets = [0, 32], sizes = [1, 32], strides = [1, 1]} : vector<1x128xf32> to vector<1x32xf32>
    %132 = vector.extract_strided_slice %129 {offsets = [0, 64], sizes = [1, 32], strides = [1, 1]} : vector<1x128xf32> to vector<1x32xf32>
    %133 = vector.extract_strided_slice %129 {offsets = [0, 96], sizes = [1, 32], strides = [1, 1]} : vector<1x128xf32> to vector<1x32xf32>
    %134 = arith.mulf %131, %96 : vector<1x32xf32>
    %135 = arith.mulf %130, %132 : vector<1x32xf32>
    %136 = arith.addf %134, %135 : vector<1x32xf32>
    %137 = math.tanh %136 : vector<1x32xf32>
    %138 = arith.mulf %133, %137 : vector<1x32xf32>
    %cst_49 = arith.constant dense<0.000000e+00> : vector<1x128xf32>
    %139 = tpu.matmul %138, %2, %cst_49 {dimension_numbers = #tpu.dot_dimension_numbers<[1], [0], [0], [1], [0, 0, 1, 1], [], []>} : vector<1x32xf32>, vector<32x128xf32>, vector<1x128xf32> -> vector<1x128xf32>
    %140 = arith.addf %119, %139 : vector<1x128xf32>
    %141 = arith.negf %140 : vector<1x128xf32>
    %142 = math.exp %141 : vector<1x128xf32>
    %cst_50 = arith.constant 1.000000e+00 : f32
    %143 = vector.broadcast %cst_50 : f32 to vector<1x128xf32>
    %144 = arith.addf %143, %142 : vector<1x128xf32>
    %145 = arith.divf %143, %144 : vector<1x128xf32>
    %146 = arith.mulf %145, %14 : vector<1x128xf32>
    %147 = arith.addf %146, %17 : vector<1x128xf32>
    %148 = vector.extract_strided_slice %147 {offsets = [0, 0], sizes = [1, 32], strides = [1, 1]} : vector<1x128xf32> to vector<1x32xf32>
    %149 = vector.extract_strided_slice %147 {offsets = [0, 32], sizes = [1, 32], strides = [1, 1]} : vector<1x128xf32> to vector<1x32xf32>
    %150 = vector.extract_strided_slice %147 {offsets = [0, 64], sizes = [1, 32], strides = [1, 1]} : vector<1x128xf32> to vector<1x32xf32>
    %151 = vector.extract_strided_slice %147 {offsets = [0, 96], sizes = [1, 32], strides = [1, 1]} : vector<1x128xf32> to vector<1x32xf32>
    %152 = arith.mulf %149, %114 : vector<1x32xf32>
    %153 = arith.mulf %148, %150 : vector<1x32xf32>
    %154 = arith.addf %152, %153 : vector<1x32xf32>
    %155 = math.tanh %154 : vector<1x32xf32>
    %156 = arith.mulf %151, %155 : vector<1x32xf32>
    %c0_51 = arith.constant 0 : index
    %c64 = arith.constant 64 : index
    %157 = vector.load %arg10[%c0_51, %c64] : memref<1x256xf32, #tpu.memory_space<vmem>>, vector<1x32xf32>
    tpu.vector_store %arg10[%c0_51, %c64], %156 {strides = array<i32>} : memref<1x256xf32, #tpu.memory_space<vmem>>, vector<1x32xf32>,
    %cst_52 = arith.constant dense<0.000000e+00> : vector<1x128xf32>
    %158 = tpu.matmul %156, %3, %cst_52 {dimension_numbers = #tpu.dot_dimension_numbers<[1], [0], [0], [1], [0, 0, 1, 1], [], []>} : vector<1x32xf32>, vector<32x128xf32>, vector<1x128xf32> -> vector<1x128xf32>
    %159 = arith.addf %158, %5 : vector<1x128xf32>
    %160 = vector.extract_strided_slice %29 {offsets = [3, 0], sizes = [1, 128], strides = [1, 1]} : vector<8x128xf32> to vector<1x128xf32>
    %cst_53 = arith.constant dense<0.000000e+00> : vector<1x128xf32>
    %161 = tpu.matmul %138, %1, %cst_53 {dimension_numbers = #tpu.dot_dimension_numbers<[1], [0], [0], [1], [0, 0, 1, 1], [], []>} : vector<1x32xf32>, vector<32x128xf32>, vector<1x128xf32> -> vector<1x128xf32>
    %162 = arith.addf %160, %161 : vector<1x128xf32>
    %163 = arith.negf %162 : vector<1x128xf32>
    %164 = math.exp %163 : vector<1x128xf32>
    %cst_54 = arith.constant 1.000000e+00 : f32
    %165 = vector.broadcast %cst_54 : f32 to vector<1x128xf32>
    %166 = arith.addf %165, %164 : vector<1x128xf32>
    %167 = arith.divf %165, %166 : vector<1x128xf32>
    %168 = arith.mulf %167, %14 : vector<1x128xf32>
    %169 = arith.addf %168, %17 : vector<1x128xf32>
    %170 = vector.extract_strided_slice %169 {offsets = [0, 0], sizes = [1, 32], strides = [1, 1]} : vector<1x128xf32> to vector<1x32xf32>
    %171 = vector.extract_strided_slice %169 {offsets = [0, 32], sizes = [1, 32], strides = [1, 1]} : vector<1x128xf32> to vector<1x32xf32>
    %172 = vector.extract_strided_slice %169 {offsets = [0, 64], sizes = [1, 32], strides = [1, 1]} : vector<1x128xf32> to vector<1x32xf32>
    %173 = vector.extract_strided_slice %169 {offsets = [0, 96], sizes = [1, 32], strides = [1, 1]} : vector<1x128xf32> to vector<1x32xf32>
    %174 = arith.mulf %171, %136 : vector<1x32xf32>
    %175 = arith.mulf %170, %172 : vector<1x32xf32>
    %176 = arith.addf %174, %175 : vector<1x32xf32>
    %177 = math.tanh %176 : vector<1x32xf32>
    %178 = arith.mulf %173, %177 : vector<1x32xf32>
    %cst_55 = arith.constant dense<0.000000e+00> : vector<1x128xf32>
    %179 = tpu.matmul %178, %2, %cst_55 {dimension_numbers = #tpu.dot_dimension_numbers<[1], [0], [0], [1], [0, 0, 1, 1], [], []>} : vector<1x32xf32>, vector<32x128xf32>, vector<1x128xf32> -> vector<1x128xf32>
    %180 = arith.addf %159, %179 : vector<1x128xf32>
    %181 = arith.negf %180 : vector<1x128xf32>
    %182 = math.exp %181 : vector<1x128xf32>
    %cst_56 = arith.constant 1.000000e+00 : f32
    %183 = vector.broadcast %cst_56 : f32 to vector<1x128xf32>
    %184 = arith.addf %183, %182 : vector<1x128xf32>
    %185 = arith.divf %183, %184 : vector<1x128xf32>
    %186 = arith.mulf %185, %14 : vector<1x128xf32>
    %187 = arith.addf %186, %17 : vector<1x128xf32>
    %188 = vector.extract_strided_slice %187 {offsets = [0, 0], sizes = [1, 32], strides = [1, 1]} : vector<1x128xf32> to vector<1x32xf32>
    %189 = vector.extract_strided_slice %187 {offsets = [0, 32], sizes = [1, 32], strides = [1, 1]} : vector<1x128xf32> to vector<1x32xf32>
    %190 = vector.extract_strided_slice %187 {offsets = [0, 64], sizes = [1, 32], strides = [1, 1]} : vector<1x128xf32> to vector<1x32xf32>
    %191 = vector.extract_strided_slice %187 {offsets = [0, 96], sizes = [1, 32], strides = [1, 1]} : vector<1x128xf32> to vector<1x32xf32>
    %192 = arith.mulf %189, %154 : vector<1x32xf32>
    %193 = arith.mulf %188, %190 : vector<1x32xf32>
    %194 = arith.addf %192, %193 : vector<1x32xf32>
    %195 = math.tanh %194 : vector<1x32xf32>
    %196 = arith.mulf %191, %195 : vector<1x32xf32>
    %c0_57 = arith.constant 0 : index
    %c96 = arith.constant 96 : index
    %197 = vector.load %arg10[%c0_57, %c96] : memref<1x256xf32, #tpu.memory_space<vmem>>, vector<1x32xf32>
    tpu.vector_store %arg10[%c0_57, %c96], %196 {strides = array<i32>} : memref<1x256xf32, #tpu.memory_space<vmem>>, vector<1x32xf32>,
    %cst_58 = arith.constant dense<0.000000e+00> : vector<1x128xf32>
    %198 = tpu.matmul %196, %3, %cst_58 {dimension_numbers = #tpu.dot_dimension_numbers<[1], [0], [0], [1], [0, 0, 1, 1], [], []>} : vector<1x32xf32>, vector<32x128xf32>, vector<1x128xf32> -> vector<1x128xf32>
    %199 = arith.addf %198, %5 : vector<1x128xf32>
    %200 = vector.extract_strided_slice %29 {offsets = [4, 0], sizes = [1, 128], strides = [1, 1]} : vector<8x128xf32> to vector<1x128xf32>
    %cst_59 = arith.constant dense<0.000000e+00> : vector<1x128xf32>
    %201 = tpu.matmul %178, %1, %cst_59 {dimension_numbers = #tpu.dot_dimension_numbers<[1], [0], [0], [1], [0, 0, 1, 1], [], []>} : vector<1x32xf32>, vector<32x128xf32>, vector<1x128xf32> -> vector<1x128xf32>
    %202 = arith.addf %200, %201 : vector<1x128xf32>
    %203 = arith.negf %202 : vector<1x128xf32>
    %204 = math.exp %203 : vector<1x128xf32>
    %cst_60 = arith.constant 1.000000e+00 : f32
    %205 = vector.broadcast %cst_60 : f32 to vector<1x128xf32>
    %206 = arith.addf %205, %204 : vector<1x128xf32>
    %207 = arith.divf %205, %206 : vector<1x128xf32>
    %208 = arith.mulf %207, %14 : vector<1x128xf32>
    %209 = arith.addf %208, %17 : vector<1x128xf32>
    %210 = vector.extract_strided_slice %209 {offsets = [0, 0], sizes = [1, 32], strides = [1, 1]} : vector<1x128xf32> to vector<1x32xf32>
    %211 = vector.extract_strided_slice %209 {offsets = [0, 32], sizes = [1, 32], strides = [1, 1]} : vector<1x128xf32> to vector<1x32xf32>
    %212 = vector.extract_strided_slice %209 {offsets = [0, 64], sizes = [1, 32], strides = [1, 1]} : vector<1x128xf32> to vector<1x32xf32>
    %213 = vector.extract_strided_slice %209 {offsets = [0, 96], sizes = [1, 32], strides = [1, 1]} : vector<1x128xf32> to vector<1x32xf32>
    %214 = arith.mulf %211, %176 : vector<1x32xf32>
    %215 = arith.mulf %210, %212 : vector<1x32xf32>
    %216 = arith.addf %214, %215 : vector<1x32xf32>
    %217 = math.tanh %216 : vector<1x32xf32>
    %218 = arith.mulf %213, %217 : vector<1x32xf32>
    %cst_61 = arith.constant dense<0.000000e+00> : vector<1x128xf32>
    %219 = tpu.matmul %218, %2, %cst_61 {dimension_numbers = #tpu.dot_dimension_numbers<[1], [0], [0], [1], [0, 0, 1, 1], [], []>} : vector<1x32xf32>, vector<32x128xf32>, vector<1x128xf32> -> vector<1x128xf32>
    %220 = arith.addf %199, %219 : vector<1x128xf32>
    %221 = arith.negf %220 : vector<1x128xf32>
    %222 = math.exp %221 : vector<1x128xf32>
    %cst_62 = arith.constant 1.000000e+00 : f32
    %223 = vector.broadcast %cst_62 : f32 to vector<1x128xf32>
    %224 = arith.addf %223, %222 : vector<1x128xf32>
    %225 = arith.divf %223, %224 : vector<1x128xf32>
    %226 = arith.mulf %225, %14 : vector<1x128xf32>
    %227 = arith.addf %226, %17 : vector<1x128xf32>
    %228 = vector.extract_strided_slice %227 {offsets = [0, 0], sizes = [1, 32], strides = [1, 1]} : vector<1x128xf32> to vector<1x32xf32>
    %229 = vector.extract_strided_slice %227 {offsets = [0, 32], sizes = [1, 32], strides = [1, 1]} : vector<1x128xf32> to vector<1x32xf32>
    %230 = vector.extract_strided_slice %227 {offsets = [0, 64], sizes = [1, 32], strides = [1, 1]} : vector<1x128xf32> to vector<1x32xf32>
    %231 = vector.extract_strided_slice %227 {offsets = [0, 96], sizes = [1, 32], strides = [1, 1]} : vector<1x128xf32> to vector<1x32xf32>
    %232 = arith.mulf %229, %194 : vector<1x32xf32>
    %233 = arith.mulf %228, %230 : vector<1x32xf32>
    %234 = arith.addf %232, %233 : vector<1x32xf32>
    %235 = math.tanh %234 : vector<1x32xf32>
    %236 = arith.mulf %231, %235 : vector<1x32xf32>
    %c0_63 = arith.constant 0 : index
    %c128 = arith.constant 128 : index
    %237 = vector.load %arg10[%c0_63, %c128] : memref<1x256xf32, #tpu.memory_space<vmem>>, vector<1x32xf32>
    tpu.vector_store %arg10[%c0_63, %c128], %236 {strides = array<i32>} : memref<1x256xf32, #tpu.memory_space<vmem>>, vector<1x32xf32>,
    %cst_64 = arith.constant dense<0.000000e+00> : vector<1x128xf32>
    %238 = tpu.matmul %236, %3, %cst_64 {dimension_numbers = #tpu.dot_dimension_numbers<[1], [0], [0], [1], [0, 0, 1, 1], [], []>} : vector<1x32xf32>, vector<32x128xf32>, vector<1x128xf32> -> vector<1x128xf32>
    %239 = arith.addf %238, %5 : vector<1x128xf32>
    %240 = vector.extract_strided_slice %29 {offsets = [5, 0], sizes = [1, 128], strides = [1, 1]} : vector<8x128xf32> to vector<1x128xf32>
    %cst_65 = arith.constant dense<0.000000e+00> : vector<1x128xf32>
    %241 = tpu.matmul %218, %1, %cst_65 {dimension_numbers = #tpu.dot_dimension_numbers<[1], [0], [0], [1], [0, 0, 1, 1], [], []>} : vector<1x32xf32>, vector<32x128xf32>, vector<1x128xf32> -> vector<1x128xf32>
    %242 = arith.addf %240, %241 : vector<1x128xf32>
    %243 = arith.negf %242 : vector<1x128xf32>
    %244 = math.exp %243 : vector<1x128xf32>
    %cst_66 = arith.constant 1.000000e+00 : f32
    %245 = vector.broadcast %cst_66 : f32 to vector<1x128xf32>
    %246 = arith.addf %245, %244 : vector<1x128xf32>
    %247 = arith.divf %245, %246 : vector<1x128xf32>
    %248 = arith.mulf %247, %14 : vector<1x128xf32>
    %249 = arith.addf %248, %17 : vector<1x128xf32>
    %250 = vector.extract_strided_slice %249 {offsets = [0, 0], sizes = [1, 32], strides = [1, 1]} : vector<1x128xf32> to vector<1x32xf32>
    %251 = vector.extract_strided_slice %249 {offsets = [0, 32], sizes = [1, 32], strides = [1, 1]} : vector<1x128xf32> to vector<1x32xf32>
    %252 = vector.extract_strided_slice %249 {offsets = [0, 64], sizes = [1, 32], strides = [1, 1]} : vector<1x128xf32> to vector<1x32xf32>
    %253 = vector.extract_strided_slice %249 {offsets = [0, 96], sizes = [1, 32], strides = [1, 1]} : vector<1x128xf32> to vector<1x32xf32>
    %254 = arith.mulf %251, %216 : vector<1x32xf32>
    %255 = arith.mulf %250, %252 : vector<1x32xf32>
    %256 = arith.addf %254, %255 : vector<1x32xf32>
    %257 = math.tanh %256 : vector<1x32xf32>
    %258 = arith.mulf %253, %257 : vector<1x32xf32>
    %cst_67 = arith.constant dense<0.000000e+00> : vector<1x128xf32>
    %259 = tpu.matmul %258, %2, %cst_67 {dimension_numbers = #tpu.dot_dimension_numbers<[1], [0], [0], [1], [0, 0, 1, 1], [], []>} : vector<1x32xf32>, vector<32x128xf32>, vector<1x128xf32> -> vector<1x128xf32>
    %260 = arith.addf %239, %259 : vector<1x128xf32>
    %261 = arith.negf %260 : vector<1x128xf32>
    %262 = math.exp %261 : vector<1x128xf32>
    %cst_68 = arith.constant 1.000000e+00 : f32
    %263 = vector.broadcast %cst_68 : f32 to vector<1x128xf32>
    %264 = arith.addf %263, %262 : vector<1x128xf32>
    %265 = arith.divf %263, %264 : vector<1x128xf32>
    %266 = arith.mulf %265, %14 : vector<1x128xf32>
    %267 = arith.addf %266, %17 : vector<1x128xf32>
    %268 = vector.extract_strided_slice %267 {offsets = [0, 0], sizes = [1, 32], strides = [1, 1]} : vector<1x128xf32> to vector<1x32xf32>
    %269 = vector.extract_strided_slice %267 {offsets = [0, 32], sizes = [1, 32], strides = [1, 1]} : vector<1x128xf32> to vector<1x32xf32>
    %270 = vector.extract_strided_slice %267 {offsets = [0, 64], sizes = [1, 32], strides = [1, 1]} : vector<1x128xf32> to vector<1x32xf32>
    %271 = vector.extract_strided_slice %267 {offsets = [0, 96], sizes = [1, 32], strides = [1, 1]} : vector<1x128xf32> to vector<1x32xf32>
    %272 = arith.mulf %269, %234 : vector<1x32xf32>
    %273 = arith.mulf %268, %270 : vector<1x32xf32>
    %274 = arith.addf %272, %273 : vector<1x32xf32>
    %275 = math.tanh %274 : vector<1x32xf32>
    %276 = arith.mulf %271, %275 : vector<1x32xf32>
    %c0_69 = arith.constant 0 : index
    %c160 = arith.constant 160 : index
    %277 = vector.load %arg10[%c0_69, %c160] : memref<1x256xf32, #tpu.memory_space<vmem>>, vector<1x32xf32>
    tpu.vector_store %arg10[%c0_69, %c160], %276 {strides = array<i32>} : memref<1x256xf32, #tpu.memory_space<vmem>>, vector<1x32xf32>,
    %cst_70 = arith.constant dense<0.000000e+00> : vector<1x128xf32>
    %278 = tpu.matmul %276, %3, %cst_70 {dimension_numbers = #tpu.dot_dimension_numbers<[1], [0], [0], [1], [0, 0, 1, 1], [], []>} : vector<1x32xf32>, vector<32x128xf32>, vector<1x128xf32> -> vector<1x128xf32>
    %279 = arith.addf %278, %5 : vector<1x128xf32>
    %280 = vector.extract_strided_slice %29 {offsets = [6, 0], sizes = [1, 128], strides = [1, 1]} : vector<8x128xf32> to vector<1x128xf32>
    %cst_71 = arith.constant dense<0.000000e+00> : vector<1x128xf32>
    %281 = tpu.matmul %258, %1, %cst_71 {dimension_numbers = #tpu.dot_dimension_numbers<[1], [0], [0], [1], [0, 0, 1, 1], [], []>} : vector<1x32xf32>, vector<32x128xf32>, vector<1x128xf32> -> vector<1x128xf32>
    %282 = arith.addf %280, %281 : vector<1x128xf32>
    %283 = arith.negf %282 : vector<1x128xf32>
    %284 = math.exp %283 : vector<1x128xf32>
    %cst_72 = arith.constant 1.000000e+00 : f32
    %285 = vector.broadcast %cst_72 : f32 to vector<1x128xf32>
    %286 = arith.addf %285, %284 : vector<1x128xf32>
    %287 = arith.divf %285, %286 : vector<1x128xf32>
    %288 = arith.mulf %287, %14 : vector<1x128xf32>
    %289 = arith.addf %288, %17 : vector<1x128xf32>
    %290 = vector.extract_strided_slice %289 {offsets = [0, 0], sizes = [1, 32], strides = [1, 1]} : vector<1x128xf32> to vector<1x32xf32>
    %291 = vector.extract_strided_slice %289 {offsets = [0, 32], sizes = [1, 32], strides = [1, 1]} : vector<1x128xf32> to vector<1x32xf32>
    %292 = vector.extract_strided_slice %289 {offsets = [0, 64], sizes = [1, 32], strides = [1, 1]} : vector<1x128xf32> to vector<1x32xf32>
    %293 = vector.extract_strided_slice %289 {offsets = [0, 96], sizes = [1, 32], strides = [1, 1]} : vector<1x128xf32> to vector<1x32xf32>
    %294 = arith.mulf %291, %256 : vector<1x32xf32>
    %295 = arith.mulf %290, %292 : vector<1x32xf32>
    %296 = arith.addf %294, %295 : vector<1x32xf32>
    %297 = math.tanh %296 : vector<1x32xf32>
    %298 = arith.mulf %293, %297 : vector<1x32xf32>
    %cst_73 = arith.constant dense<0.000000e+00> : vector<1x128xf32>
    %299 = tpu.matmul %298, %2, %cst_73 {dimension_numbers = #tpu.dot_dimension_numbers<[1], [0], [0], [1], [0, 0, 1, 1], [], []>} : vector<1x32xf32>, vector<32x128xf32>, vector<1x128xf32> -> vector<1x128xf32>
    %300 = arith.addf %279, %299 : vector<1x128xf32>
    %301 = arith.negf %300 : vector<1x128xf32>
    %302 = math.exp %301 : vector<1x128xf32>
    %cst_74 = arith.constant 1.000000e+00 : f32
    %303 = vector.broadcast %cst_74 : f32 to vector<1x128xf32>
    %304 = arith.addf %303, %302 : vector<1x128xf32>
    %305 = arith.divf %303, %304 : vector<1x128xf32>
    %306 = arith.mulf %305, %14 : vector<1x128xf32>
    %307 = arith.addf %306, %17 : vector<1x128xf32>
    %308 = vector.extract_strided_slice %307 {offsets = [0, 0], sizes = [1, 32], strides = [1, 1]} : vector<1x128xf32> to vector<1x32xf32>
    %309 = vector.extract_strided_slice %307 {offsets = [0, 32], sizes = [1, 32], strides = [1, 1]} : vector<1x128xf32> to vector<1x32xf32>
    %310 = vector.extract_strided_slice %307 {offsets = [0, 64], sizes = [1, 32], strides = [1, 1]} : vector<1x128xf32> to vector<1x32xf32>
    %311 = vector.extract_strided_slice %307 {offsets = [0, 96], sizes = [1, 32], strides = [1, 1]} : vector<1x128xf32> to vector<1x32xf32>
    %312 = arith.mulf %309, %274 : vector<1x32xf32>
    %313 = arith.mulf %308, %310 : vector<1x32xf32>
    %314 = arith.addf %312, %313 : vector<1x32xf32>
    %315 = math.tanh %314 : vector<1x32xf32>
    %316 = arith.mulf %311, %315 : vector<1x32xf32>
    %c0_75 = arith.constant 0 : index
    %c192 = arith.constant 192 : index
    %317 = vector.load %arg10[%c0_75, %c192] : memref<1x256xf32, #tpu.memory_space<vmem>>, vector<1x32xf32>
    tpu.vector_store %arg10[%c0_75, %c192], %316 {strides = array<i32>} : memref<1x256xf32, #tpu.memory_space<vmem>>, vector<1x32xf32>,
    %cst_76 = arith.constant dense<0.000000e+00> : vector<1x128xf32>
    %318 = tpu.matmul %316, %3, %cst_76 {dimension_numbers = #tpu.dot_dimension_numbers<[1], [0], [0], [1], [0, 0, 1, 1], [], []>} : vector<1x32xf32>, vector<32x128xf32>, vector<1x128xf32> -> vector<1x128xf32>
    %319 = arith.addf %318, %5 : vector<1x128xf32>
    %320 = vector.extract_strided_slice %29 {offsets = [7, 0], sizes = [1, 128], strides = [1, 1]} : vector<8x128xf32> to vector<1x128xf32>
    %cst_77 = arith.constant dense<0.000000e+00> : vector<1x128xf32>
    %321 = tpu.matmul %298, %1, %cst_77 {dimension_numbers = #tpu.dot_dimension_numbers<[1], [0], [0], [1], [0, 0, 1, 1], [], []>} : vector<1x32xf32>, vector<32x128xf32>, vector<1x128xf32> -> vector<1x128xf32>
    %322 = arith.addf %320, %321 : vector<1x128xf32>
    %323 = arith.negf %322 : vector<1x128xf32>
    %324 = math.exp %323 : vector<1x128xf32>
    %cst_78 = arith.constant 1.000000e+00 : f32
    %325 = vector.broadcast %cst_78 : f32 to vector<1x128xf32>
    %326 = arith.addf %325, %324 : vector<1x128xf32>
    %327 = arith.divf %325, %326 : vector<1x128xf32>
    %328 = arith.mulf %327, %14 : vector<1x128xf32>
    %329 = arith.addf %328, %17 : vector<1x128xf32>
    %330 = vector.extract_strided_slice %329 {offsets = [0, 0], sizes = [1, 32], strides = [1, 1]} : vector<1x128xf32> to vector<1x32xf32>
    %331 = vector.extract_strided_slice %329 {offsets = [0, 32], sizes = [1, 32], strides = [1, 1]} : vector<1x128xf32> to vector<1x32xf32>
    %332 = vector.extract_strided_slice %329 {offsets = [0, 64], sizes = [1, 32], strides = [1, 1]} : vector<1x128xf32> to vector<1x32xf32>
    %333 = vector.extract_strided_slice %329 {offsets = [0, 96], sizes = [1, 32], strides = [1, 1]} : vector<1x128xf32> to vector<1x32xf32>
    %334 = arith.mulf %331, %296 : vector<1x32xf32>
    %335 = arith.mulf %330, %332 : vector<1x32xf32>
    %336 = arith.addf %334, %335 : vector<1x32xf32>
    %337 = math.tanh %336 : vector<1x32xf32>
    %338 = arith.mulf %333, %337 : vector<1x32xf32>
    %cst_79 = arith.constant dense<0.000000e+00> : vector<1x128xf32>
    %339 = tpu.matmul %338, %2, %cst_79 {dimension_numbers = #tpu.dot_dimension_numbers<[1], [0], [0], [1], [0, 0, 1, 1], [], []>} : vector<1x32xf32>, vector<32x128xf32>, vector<1x128xf32> -> vector<1x128xf32>
    %340 = arith.addf %319, %339 : vector<1x128xf32>
    %341 = arith.negf %340 : vector<1x128xf32>
    %342 = math.exp %341 : vector<1x128xf32>
    %cst_80 = arith.constant 1.000000e+00 : f32
    %343 = vector.broadcast %cst_80 : f32 to vector<1x128xf32>
    %344 = arith.addf %343, %342 : vector<1x128xf32>
    %345 = arith.divf %343, %344 : vector<1x128xf32>
    %346 = arith.mulf %345, %14 : vector<1x128xf32>
    %347 = arith.addf %346, %17 : vector<1x128xf32>
    %348 = vector.extract_strided_slice %347 {offsets = [0, 0], sizes = [1, 32], strides = [1, 1]} : vector<1x128xf32> to vector<1x32xf32>
    %349 = vector.extract_strided_slice %347 {offsets = [0, 32], sizes = [1, 32], strides = [1, 1]} : vector<1x128xf32> to vector<1x32xf32>
    %350 = vector.extract_strided_slice %347 {offsets = [0, 64], sizes = [1, 32], strides = [1, 1]} : vector<1x128xf32> to vector<1x32xf32>
    %351 = vector.extract_strided_slice %347 {offsets = [0, 96], sizes = [1, 32], strides = [1, 1]} : vector<1x128xf32> to vector<1x32xf32>
    %352 = arith.mulf %349, %314 : vector<1x32xf32>
    %353 = arith.mulf %348, %350 : vector<1x32xf32>
    %354 = arith.addf %352, %353 : vector<1x32xf32>
    %355 = math.tanh %354 : vector<1x32xf32>
    %356 = arith.mulf %351, %355 : vector<1x32xf32>
    %c0_81 = arith.constant 0 : index
    %c224 = arith.constant 224 : index
    %357 = vector.load %arg10[%c0_81, %c224] : memref<1x256xf32, #tpu.memory_space<vmem>>, vector<1x32xf32>
    tpu.vector_store %arg10[%c0_81, %c224], %356 {strides = array<i32>} : memref<1x256xf32, #tpu.memory_space<vmem>>, vector<1x32xf32>,
    %c0_82 = arith.constant 0 : index
    %c0_83 = arith.constant 0 : index
    %c0_84 = arith.constant 0 : index
    %358 = vector.load %arg11[%c0_82, %c0_83, %c0_84] : memref<2x1x32xf32, #tpu.memory_space<vmem>>, vector<1x1x32xf32>
    %359 = vector.shape_cast %358 : vector<1x1x32xf32> to vector<1x32xf32>
    %360 = vector.shape_cast %338 : vector<1x32xf32> to vector<1x1x32xf32>
    tpu.vector_store %arg11[%c0_82, %c0_83, %c0_84], %360 {strides = array<i32>} : memref<2x1x32xf32, #tpu.memory_space<vmem>>, vector<1x1x32xf32>,
    %c1_85 = arith.constant 1 : index
    %c0_86 = arith.constant 0 : index
    %c0_87 = arith.constant 0 : index
    %361 = vector.load %arg11[%c1_85, %c0_86, %c0_87] : memref<2x1x32xf32, #tpu.memory_space<vmem>>, vector<1x1x32xf32>
    %362 = vector.shape_cast %361 : vector<1x1x32xf32> to vector<1x32xf32>
    %363 = vector.shape_cast %356 : vector<1x32xf32> to vector<1x1x32xf32>
    tpu.vector_store %arg11[%c1_85, %c0_86, %c0_87], %363 {strides = array<i32>} : memref<2x1x32xf32, #tpu.memory_space<vmem>>, vector<1x1x32xf32>,
    %c0_88 = arith.constant 0 : index
    %c0_89 = arith.constant 0 : index
    %c0_90 = arith.constant 0 : index
    %364 = vector.load %arg12[%c0_88, %c0_89, %c0_90] : memref<2x1x32xf32, #tpu.memory_space<vmem>>, vector<1x1x32xf32>
    %365 = vector.shape_cast %364 : vector<1x1x32xf32> to vector<1x32xf32>
    %366 = vector.shape_cast %336 : vector<1x32xf32> to vector<1x1x32xf32>
    tpu.vector_store %arg12[%c0_88, %c0_89, %c0_90], %366 {strides = array<i32>} : memref<2x1x32xf32, #tpu.memory_space<vmem>>, vector<1x1x32xf32>,
    %c1_91 = arith.constant 1 : index
    %c0_92 = arith.constant 0 : index
    %c0_93 = arith.constant 0 : index
    %367 = vector.load %arg12[%c1_91, %c0_92, %c0_93] : memref<2x1x32xf32, #tpu.memory_space<vmem>>, vector<1x1x32xf32>
    %368 = vector.shape_cast %367 : vector<1x1x32xf32> to vector<1x32xf32>
    %369 = vector.shape_cast %354 : vector<1x32xf32> to vector<1x1x32xf32>
    tpu.vector_store %arg12[%c1_91, %c0_92, %c0_93], %369 {strides = array<i32>} : memref<2x1x32xf32, #tpu.memory_space<vmem>>, vector<1x1x32xf32>,
    return
  }
}

</mosaic_0001>

<bundles_post_ra>
// kernel: tpu_custom_call.1
= control target key start
LH: loop header
LB: loop body
LE: loop exit
PB: predicated region body
PF: predicated region fallthrough
CT: control target
= control target key end

     0   :  { %18 = vsyncpa [#allocation3], 0  ;;  %s2353_s0 = inlined_call_operand.vmem [shape: s32[8,1], index: 0, kind: input, shape index: {}]   ;;  %s2354_s1 = inlined_call_operand.vmem [shape: f32[50,32], index: 1, kind: input, shape index: {}]   ;;  %s2355_s2 = inlined_call_operand.vmem [shape: f32[32,128], index: 2, kind: input, shape index: {}]   ;;  %s2356_s3 = inlined_call_operand.vmem [shape: f32[32,128], index: 3, kind: input, shape index: {}]   ;;  %s2357_s4 = inlined_call_operand.vmem [shape: f32[32,128], index: 4, kind: input, shape index: {}]   ;;  %s2358_s5 = inlined_call_operand.hbm [shape: f32[32,128], index: 5, kind: input, shape index: {}]   ;;  %s2359_s6 = inlined_call_operand.vmem [shape: f32[1,128], index: 6, kind: input, shape index: {}]   ;;  %s2360_s7 = inlined_call_operand.vmem [shape: f32[1,128], index: 7, kind: input, shape index: {}]   ;;  %s2361_s8 = inlined_call_operand.vmem [shape: f32[2,1,32], index: 8, kind: input, shape index: {}]   ;;  %s2362_s9 = inlined_call_operand.vmem [shape: f32[2,1,32], index: 9, kind: input, shape index: {}]   ;;  %s2363_s10 = inlined_call_operand.hbm [shape: f32[1,256], index: 10, kind: output, shape index: {0}]   ;;  %s2364_s11 = inlined_call_operand.hbm [shape: f32[2,1,32], index: 11, kind: output, shape index: {1}]   ;;  %s2365_s12 = inlined_call_operand.hbm [shape: f32[2,1,32], index: 12, kind: output, shape index: {2}]  }
   0x1   :  { %19 = vsyncpa [#allocation4], 0 }
   0x2   :  { %20 = vsyncpa [#allocation7], 0  ;;  %s35_s23 = sshll.u32 %s2358_s5, 4  ;;  %s1771_s24 = smov [#allocation2]   ;;  %s36_s23 = int_to_ptr.hbm [resolvable:$true] %s35_s23 }
   0x3   :  { %s37_s25 = sshll.u32 %s1771_s24, 4  ;;  %s1772_s26 = smov 128   ;;  %s38_s25 = int_to_ptr.vmem [resolvable:$true] %s37_s25 }
   0x4   :  { %s1773_s27 = smov 8  }
   0x5   :  { %43 = dma.hbm_to_vmem [thread:$0]  %s36_s23, 512, %s38_s25, [#allocation3], %s1772_s26, %s1772_s26, %s1773_s27  }
   0x6   :  { %1765 = dma.done.wait [#allocation3], 512  }
   0x7   :  { %1766 = vsyncadd [#allocation3], 4294966784  ;;  %v1774_v0 = vmov 0   ;;  %vm98_vm0 = vcmask 1041408   ;;  %v81_v1 = vld [vmem:[%s2353_s0] sm:$0xff]  ;;  %v92_v3 = vld [vmem:[%s2354_s1 + $0x28] sm:$0xff]  ;;  %v74_v17 = vlaneseq }
   0x8   :  { %1568 = vset.pattern.permute.xlu0 %v1774_v0  ;;  %v93_v2 = vld [vmem:[%s2354_s1 + $0x30] sm:$0x3]  ;;  %v91_v4 = vld [vmem:[%s2354_s1 + $0x20] sm:$0xff]  ;;  %v90_v5 = vld [vmem:[%s2354_s1 + $0x18] sm:$0xff]  ;;  %vm125_vm1 = vcmask 261120   ;;  %vm94_vm2 = vcmask 408576  }
   0x9   :  { %83 = vperm.xlu0 %1568, %v81_v1   ;;  %1509 = vmatpush.msk.msra.mxu0 %vm98_vm0, %v93_v2  ;;  %v89_v6 = vld [vmem:[%s2354_s1 + $0x10] sm:$0xff]  ;;  %v88_v7 = vld [vmem:[%s2354_s1 + $0x8] sm:$0xff]  ;;  %v87_v8 = vld [vmem:[%s2354_s1] sm:$0xff]  ;;  %v75_v18 = vand.u32 127, %v74_v17  ;;  %v1775_v20 = vmov 0.0   ;;  %s1776_s22 = smov 32  }
   0xa   :  { %v1880_v9 = vld [vmem:[%s2356_s3 + $0x18] sm:$0xff]  ;;  %v1885_v10 = vld [vmem:[%s2356_s3 + $0x10] sm:$0xff]  ;;  %v1897_v13 = vld [vmem:[%s2356_s3 + $0x8] sm:$0xff]  ;;  %v1777_v40 = vmov 1.0   ;;  %s1780_s17 = smov [#allocation5]   ;;  %s1464_s19 = sshll.u32 %s2363_s10, 4  ;;  %s1465_s19 = int_to_ptr.hbm [resolvable:$true] %s1464_s19 }
   0xb   :  { %112 = vmatpush.msra.mxu0 %v92_v3  ;;  %v59_v11 = vld [vmem:[%s2355_s2 + $0x18] sm:$0xff]  ;;  %193 = vmatpush.msra.mxu3 %v1880_v9  ;;  %v58_v12 = vld [vmem:[%s2355_s2 + $0x10] sm:$0xff]  ;;  %v57_v14 = vld [vmem:[%s2355_s2 + $0x8] sm:$0xff]  ;;  %vm76_vm4 = vcmp.ge.s32.totalorder %v75_v18, 64  ;;  %vm77_vm5 = vcmp.lt.s32.totalorder %v75_v18, 96  ;;  %s1462_s18 = sshll.u32 %s1780_s17, 4  ;;  %s1463_s18 = int_to_ptr.vmem [resolvable:$true] %s1462_s18 }
   0xc   :  { %141 = vmatpush.msra.mxu1 %v59_v11  ;;  %v1906_v15 = vld [vmem:[%s2356_s3] sm:$0xff]  ;;  %vm78_vm6 = vmand %vm76_vm4, %vm77_vm5  ;;  %v1945_v55 = vld [vmem:[#allocation2 + $0x18] sm:$0xff]  ;;  %vm2051_vm4 = vcmp.lt.s32.totalorder %v74_v17, 32  ;;  %s1781_s20 = smov [#allocation6]   ;;  %s1474_s10 = sshll.u32 %s2364_s11, 4  ;;  %s1475_s10 = int_to_ptr.hbm [resolvable:$true] %s1474_s10 }
   0xd   :  { %113 = vmatpush.msra.mxu0 %v91_v4  ;;  %194 = vmatpush.msra.mxu3 %v1885_v10  ;;  %v149_v16 = vld [vmem:[%s2361_s8] sm:$0x1]  ;;  %v1933_v41 = vsel %vm78_vm6, 2.0, %v1777_v40  ;;  %v1935_v44 = vsel %vm78_vm6, -1.0, %v1775_v20  ;;  %v1947_v56 = vld [vmem:[#allocation2 + $0x10] sm:$0xff]  ;;  %v1953_v57 = vld [vmem:[%s2357_s4 + $0x18] sm:$0xff] }
   0xe   :  { %142 = vmatpush.msra.mxu1 %v58_v12  ;;  %v56_v22 = vld [vmem:[%s2355_s2] sm:$0xff]  ;;  %s1778_s2 = smov 64   ;;  %170 = vmatpush.msra.mxu2 %v1945_v55  ;;  %v1955_v58 = vld [vmem:[#allocation2 + $0x8] sm:$0xff]  ;;  %v1961_v59 = vld [vmem:[%s2357_s4 + $0x10] sm:$0xff]  ;;  %s1472_s21 = sshll.u32 %s1781_s20, 4  ;;  %s1473_s21 = int_to_ptr.vmem [resolvable:$true] %s1472_s21 }
   0xf   :  { %114 = vmatpush.msra.mxu0 %v90_v5  ;;  %195 = vmatpush.msra.mxu3 %v1897_v13  ;;  %v1569_v23 = vld [vmem:[%s2362_s9] ss:$0 sm:$0xff]  ;;  %v1968_v60 = vld [vmem:[%s2357_s4 + $0x8] sm:$0xff]  ;;  %v1512_v62 = vld [vmem:[%s2361_s8 + $0x1] sm:$0x1]  ;;  %s1782_s24 = smov [#allocation8]  }
  0x10   :  { %143 = vmatpush.msra.mxu1 %v57_v14  ;;  %225 = vrot.lane.b32.xlu1 %v1569_v23, %s1776_s22  ;;  %v1570_v25 = vld [vmem:[%s2359_s6] ss:$0 sm:$0xff]  ;;  %v1571_v2 = vld [vmem:[%s2362_s9 + $0x1] ss:$0 sm:$0xff]  ;;  %s1487_s26 = sshll.u32 %s2365_s12, 4  ;;  %s1783_s27 = smov 16   ;;  %s1488_s26 = int_to_ptr.hbm [resolvable:$true] %s1487_s26 }
  0x11   :  { %115 = vmatpush.msra.mxu0 %v89_v6  ;;  %196 = vmatpush.msra.mxu3 %v1906_v15  ;;  %v1971_v61 = vld [vmem:[#allocation2] sm:$0xff]  ;;  %s1784_s28 = smov 1  }
  0x12   :  { %1515 = vmatmul.msk.f32.vlgmr.msra.gmra.mxu3 %vm125_vm1, %v149_v16  ;;  %144 = vmatpush.msra.mxu1 %v56_v22  ;;  %v1982_v63 = vld [vmem:[%s2357_s4] sm:$0xff] }
  0x13   :  { %116 = vmatpush.msra.mxu0 %v88_v7  ;;  %357 = vmatpush.msrb.mxu3 %v1880_v9  ;;  %v2027_v4 = vld [vmem:[%s2360_s7] sm:$0x1] }
  0x14   :  { %262 = vmatpush.msrb.mxu1 %v1953_v57  ;;  %171 = vmatpush.msra.mxu2 %v1947_v56 }
  0x15   :  { %117 = vmatpush.msra.mxu0 %v87_v8  ;;  %358 = vmatpush.msrb.mxu3 %v1885_v10 }
  0x16   :  { %263 = vmatpush.msrb.mxu1 %v1961_v59  ;;  %172 = vmatpush.msra.mxu2 %v1955_v58 }
  0x17   :  { %359 = vmatpush.msrb.mxu3 %v1897_v13  ;;  %428 = vmatpush.msrb.mxu0 %v1953_v57 }
  0x18   :  { %264 = vmatpush.msrb.mxu1 %v1968_v60  ;;  %173 = vmatpush.msra.mxu2 %v1971_v61 }
  0x19   :  { %360 = vmatpush.msrb.mxu3 %v1906_v15  ;;  %429 = vmatpush.msrb.mxu0 %v1961_v59 }
  0x1a   :  { %1514 = vmatmul.msk.f32.vlgmr.msra.gmra.mxu2 %vm125_vm1, %v1512_v62  ;;  %265 = vmatpush.msrb.mxu1 %v1982_v63 }
  0x1b   :  { %590 = vmatpush.msra.mxu3 %v1953_v57  ;;  %430 = vmatpush.msrb.mxu0 %v1968_v60 }
  0x1c   :  { %337 = vmatpush.msrb.mxu2 %v1945_v55 }
  0x1d   :  { %591 = vmatpush.msra.mxu3 %v1961_v59  ;;  %431 = vmatpush.msrb.mxu0 %v1982_v63 }
  0x1e   :  { %338 = vmatpush.msrb.mxu2 %v1947_v56 }
  0x1f   :  { %592 = vmatpush.msra.mxu3 %v1968_v60 }
  0x20   :  { %339 = vmatpush.msrb.mxu2 %v1955_v58 }
  0x21   :  { %593 = vmatpush.msra.mxu3 %v1982_v63 }
  0x22   :  { %340 = vmatpush.msrb.mxu2 %v1971_v61 }
  0x24   :  { %519 = vmatpush.msra.mxu2 %v1880_v9 }
  0x26   :  { %520 = vmatpush.msra.mxu2 %v1885_v10 }
  0x28   :  { %521 = vmatpush.msra.mxu2 %v1897_v13 }
  0x2a   :  { %522 = vmatpush.msra.mxu2 %v1906_v15 }
  0x7b   :  { %v84_v19 = vpop.permute.xlu0 %83 }
  0x7c   :  { %vm85_vm3 = vcmp.eq.s32.totalorder %v75_v18, %v84_v19 }
  0x7d   :  { %v86_v21 = vsel %vm85_vm3, 1.0, %v1775_v20 }
  0x7e   :  { %1510 = vmatmul.msk.f32.vlgmr.msra.gmra.mxu0 %vm94_vm2, %v86_v21 }
  0x7f   :  { %661 = vmatpush.msra.mxu0 %v1945_v55 }
  0x81   :  { %662 = vmatpush.msra.mxu0 %v1947_v56 }
  0x82   :  { %v226_v50 = vpop.permute.xlu1 %225 }
  0x83   :  { %663 = vmatpush.msra.mxu0 %v1955_v58 }
  0x85   :  { %664 = vmatpush.msra.mxu0 %v1971_v61 }
  0x95   :  { %v198_v27 = vpop.f32.mrf.mxu3 }
  0x9d   :  { %v175_v5 = vpop.f32.mrf.mxu2 }
  0x9e   :  { %v176_v6 = vadd.f32 %v175_v5, %v2027_v4 }
  0xfb   :  { %v119_v24 = vpop.f32.mrf.mxu0 }
  0xfc   :  { %1511 = vmatmul.msk.f32.vlgmr.msra.gmra.mxu1 %vm125_vm1, %v119_v24 }
  0xfd   :  { %499 = vmatpush.msra.mxu1 %v1945_v55 }
  0xff   :  { %500 = vmatpush.msra.mxu1 %v1947_v56 }
 0x101   :  { %501 = vmatpush.msra.mxu1 %v1955_v58 }
 0x103   :  { %502 = vmatpush.msra.mxu1 %v1971_v61 }
 0x179   :  { %v146_v26 = vpop.f32.mrf.mxu1 }
 0x17a   :  { %v1930_v28 = vadd.f32 %v1570_v25, %v146_v26 }
 0x17c   :  { %v201_v29 = vadd.f32 %v198_v27, %v1930_v28 }
 0x17e   :  { %v1516_v30 = vmul.f32 -1.442695, %v201_v29 }
 0x180   :  { %1572 = vpow2.f32 %v1516_v30 }
 0x186   :  { %v1573_v31 = vpop.eup %1572 }
 0x187   :  { %v205_v32 = vadd.f32 1.0, %v1573_v31 }
 0x189   :  { %1574 = vrcp.f32 %v205_v32  ;;  %v217_v36 = vand.u32 2147483648, %v205_v32  ;;  %v215_v38 = vand.u32 2147483647, %v205_v32  ;;  %vm211_vm8 = vweird.f32 %v205_v32 }
 0x18b   :  { %v218_v42 = vor.u32 1.1754944e-38, %v217_v36  ;;  %vm216_vm10 = vcmp.eq.f32.partialorder %v215_v38, 8.507059e+37 }
 0x18f   :  { %v1575_v33 = vpop.eup %1574 }
 0x190   :  { %v207_v34 = vmul.f32 %v1575_v33, %v205_v32  ;;  %vm212_vm7 = vweird.f32 %v1575_v33 }
 0x191   :  { %vm213_vm9 = vmor %vm211_vm8, %vm212_vm7 }
 0x192   :  { %v208_v35 = vsub.f32 1.0, %v207_v34 }
 0x194   :  { %v209_v37 = vmul.f32 %v1575_v33, %v208_v35 }
 0x196   :  { %v210_v39 = vadd.f32 %v1575_v33, %v209_v37 }
 0x198   :  { %v214_v43 = vsel %vm213_vm9, %v1575_v33, %v210_v39 }
 0x199   :  { %v219_v45 = vsel %vm216_vm10, %v218_v42, %v214_v43 }
 0x19a   :  { %v221_v46 = vmul.f32 %v219_v45, %v1933_v41 }
 0x19c   :  { %v222_v47 = vadd.f32 %v221_v46, %v1935_v44 }
 0x19e   :  { %230 = vrot.lane.b32.xlu0 %v222_v47, %s1778_s2  ;;  %v228_v51 = vmul.f32 %v226_v50, %v222_v47 }
 0x210   :  { %v231_v48 = vpop.permute.xlu0 %230 }
 0x211   :  { %v233_v49 = vmul.f32 %v231_v48, %v222_v47 }
 0x213   :  { %235 = vrot.lane.b32.xlu1 %v233_v49, %s1776_s22 }
 0x285   :  { %v236_v52 = vpop.permute.xlu1 %235 }
 0x286   :  { %v1941_v53 = vadd.f32 %v236_v52, %v228_v51 }
 0x288   :  { %1576 = vtanh.f32 %v1941_v53 }
 0x28e   :  { %v1577_v54 = vpop.eup %1576 }
 0x28f   :  { %241 = vrot.lane.b32.xlu2 %v1577_v54, %s1778_s2 }
 0x2e9   :  { %v242_v0 = vpop.permute.xlu2 %241 }
 0x2ea   :  { %v244_v1 = vmul.f32 %v242_v0, %v222_v47 }
 0x2ec   :  { %246 = vrot.lane.b32.xlu2 %v244_v1, %s1776_s22 }
 0x2f4   :  { %294 = vrot.lane.b32.xlu2 %v1571_v2, %s1776_s22 }
 0x346   :  { %v247_v3 = vpop.permute.xlu2 %246 }
 0x347   :  { %1517 = vmatmul.msk.f32.vlgmr.msrb.gmra.mxu1 %vm125_vm1, %v247_v3  ;;  %1520 = vmatmul.msk.f32.vlgmr.msrb.gmra.mxu3 %vm125_vm1, %v247_v3  ;;  %v391_v3 = vrot.slane %v1941_v53, 7 }
 0x348   :  { %681 = vmatpush.msrb.mxu1 %v1880_v9  ;;  %820 = vmatpush.msrb.mxu3 %v1945_v55 }
 0x34a   :  { %682 = vmatpush.msrb.mxu1 %v1885_v10  ;;  %821 = vmatpush.msrb.mxu3 %v1947_v56 }
 0x34c   :  { %683 = vmatpush.msrb.mxu1 %v1897_v13  ;;  %822 = vmatpush.msrb.mxu3 %v1955_v58 }
 0x34e   :  { %684 = vmatpush.msrb.mxu1 %v1906_v15  ;;  %823 = vmatpush.msrb.mxu3 %v1971_v61  ;;  %v295_v62 = vpop.permute.xlu2 %294 }
 0x3c4   :  { %v267_v7 = vpop.f32.mrf.mxu1 }
 0x3c5   :  { %v270_v8 = vadd.f32 %v267_v7, %v176_v6 }
 0x3c7   :  { %v1518_v11 = vmul.f32 -1.442695, %v270_v8 }
 0x3c9   :  { %1578 = vpow2.f32 %v1518_v11 }
 0x3ca   :  { %v362_v12 = vpop.f32.mrf.mxu3 }
 0x3cb   :  { %v366_v14 = vrot.slane %v362_v12, 7 }
 0x3cd   :  { %v368_v16 = vadd.f32 %v366_v14, %v1930_v28 }
 0x3cf   :  { %v1579_v18 = vpop.eup %1578  ;;  %v1521_v19 = vmul.f32 -1.442695, %v368_v16 }
 0x3d0   :  { %v274_v20 = vadd.f32 1.0, %v1579_v18 }
 0x3d1   :  { %1580 = vpow2.f32 %v1521_v19 }
 0x3d2   :  { %1582 = vrcp.f32 %v274_v20  ;;  %v286_v26 = vand.u32 2147483648, %v274_v20  ;;  %v284_v29 = vand.u32 2147483647, %v274_v20  ;;  %vm280_vm12 = vweird.f32 %v274_v20 }
 0x3d4   :  { %v287_v32 = vor.u32 1.1754944e-38, %v286_v26  ;;  %vm285_vm14 = vcmp.eq.f32.partialorder %v284_v29, 8.507059e+37 }
 0x3d7   :  { %v1581_v21 = vpop.eup %1580 }
 0x3d8   :  { %v1583_v22 = vpop.eup %1582  ;;  %v372_v23 = vadd.f32 1.0, %v1581_v21 }
 0x3d9   :  { %v276_v24 = vmul.f32 %v1583_v22, %v274_v20  ;;  %vm281_vm11 = vweird.f32 %v1583_v22 }
 0x3da   :  { %1584 = vrcp.f32 %v372_v23  ;;  %vm282_vm13 = vmor %vm280_vm12, %vm281_vm11  ;;  %v384_v38 = vand.u32 2147483648, %v372_v23  ;;  %v382_v42 = vand.u32 2147483647, %v372_v23  ;;  %vm378_vm0 = vweird.f32 %v372_v23 }
 0x3db   :  { %v277_v25 = vsub.f32 1.0, %v276_v24 }
 0x3dc   :  { %v385_v45 = vor.u32 1.1754944e-38, %v384_v38  ;;  %vm383_vm3 = vcmp.eq.f32.partialorder %v382_v42, 8.507059e+37 }
 0x3dd   :  { %v278_v27 = vmul.f32 %v1583_v22, %v277_v25 }
 0x3df   :  { %v279_v30 = vadd.f32 %v1583_v22, %v278_v27 }
 0x3e0   :  { %v1585_v31 = vpop.eup %1584 }
 0x3e1   :  { %v374_v33 = vmul.f32 %v1585_v31, %v372_v23  ;;  %v283_v34 = vsel %vm282_vm13, %v1583_v22, %v279_v30  ;;  %vm379_vm15 = vweird.f32 %v1585_v31 }
 0x3e2   :  { %v288_v35 = vsel %vm285_vm14, %v287_v32, %v283_v34  ;;  %vm380_vm2 = vmor %vm378_vm0, %vm379_vm15 }
 0x3e3   :  { %v375_v36 = vsub.f32 1.0, %v374_v33  ;;  %v290_v37 = vmul.f32 %v288_v35, %v1933_v41 }
 0x3e5   :  { %v291_v39 = vadd.f32 %v290_v37, %v1935_v44  ;;  %v376_v40 = vmul.f32 %v1585_v31, %v375_v36 }
 0x3e7   :  { %299 = vrot.lane.b32.xlu0 %v291_v39, %s1778_s2  ;;  %v377_v43 = vadd.f32 %v1585_v31, %v376_v40  ;;  %v297_v0 = vmul.f32 %v295_v62, %v291_v39 }
 0x3e9   :  { %v381_v46 = vsel %vm380_vm2, %v1585_v31, %v377_v43 }
 0x3ea   :  { %v386_v47 = vsel %vm383_vm3, %v385_v45, %v381_v46 }
 0x3eb   :  { %v388_v48 = vmul.f32 %v386_v47, %v1933_v41 }
 0x3ed   :  { %v389_v49 = vadd.f32 %v388_v48, %v1935_v44 }
 0x3ef   :  { %395 = vrot.lane.b32.xlu1 %v389_v49, %s1778_s2  ;;  %v393_v5 = vmul.f32 %v391_v3, %v389_v49 }
 0x459   :  { %v300_v50 = vpop.permute.xlu0 %299 }
 0x45a   :  { %v302_v51 = vmul.f32 %v300_v50, %v291_v39 }
 0x45c   :  { %304 = vrot.lane.b32.xlu0 %v302_v51, %s1776_s22 }
 0x461   :  { %v396_v52 = vpop.permute.xlu1 %395 }
 0x462   :  { %v398_v54 = vmul.f32 %v396_v52, %v389_v49 }
 0x464   :  { %400 = vrot.lane.b32.xlu1 %v398_v54, %s1776_s22 }
 0x4ce   :  { %v305_v1 = vpop.permute.xlu0 %304 }
 0x4cf   :  { %v2039_v2 = vadd.f32 %v305_v1, %v297_v0 }
 0x4d1   :  { %1586 = vtanh.f32 %v2039_v2 }
 0x4d6   :  { %v401_v6 = vpop.permute.xlu1 %400 }
 0x4d7   :  { %v1587_v7 = vpop.eup %1586  ;;  %v2043_v8 = vadd.f32 %v401_v6, %v393_v5 }
 0x4d8   :  { %310 = vrot.lane.b32.xlu2 %v1587_v7, %s1778_s2 }
 0x4d9   :  { %1588 = vtanh.f32 %v2043_v8 }
 0x4df   :  { %v1589_v11 = vpop.eup %1588 }
 0x4e0   :  { %406 = vrot.lane.b32.xlu0 %v1589_v11, %s1778_s2 }
 0x532   :  { %v311_v12 = vpop.permute.xlu2 %310 }
 0x533   :  { %v313_v14 = vmul.f32 %v311_v12, %v291_v39 }
 0x535   :  { %315 = vrot.lane.b32.xlu1 %v313_v14, %s1776_s22 }
 0x552   :  { %v407_v16 = vpop.permute.xlu0 %406 }
 0x553   :  { %v409_v18 = vmul.f32 %v407_v16, %v389_v49 }
 0x555   :  { %v411_v19 = vrot.slane %v409_v18, 1 }
 0x557   :  { %412 = vrot.lane.b32.xlu2 %v411_v19, %s1776_s22 }
 0x5a7   :  { %v316_v20 = vpop.permute.xlu1 %315 }
 0x5a8   :  { %322 = vst.msk [vmem:[#allocation5] sm:$0x1] %vm2051_vm4, %v316_v20  ;;  %1519 = vmatmul.msk.f32.vlgmr.msrb.gmra.mxu2 %vm125_vm1, %v316_v20 }
 0x5a9   :  { %752 = vmatpush.msrb.mxu2 %v1953_v57 }
 0x5ab   :  { %753 = vmatpush.msrb.mxu2 %v1961_v59 }
 0x5ad   :  { %754 = vmatpush.msrb.mxu2 %v1968_v60 }
 0x5af   :  { %755 = vmatpush.msrb.mxu2 %v1982_v63 }
 0x5b1   :  { %v413_v21 = vpop.permute.xlu2 %412 }
 0x5b2   :  { %1522 = vmatmul.msk.f32.vlgmr.msrb.gmra.mxu0 %vm125_vm1, %v413_v21  ;;  %1525 = vmatmul.msk.f32.vlgmr.msra.gmra.mxu2 %vm125_vm1, %v413_v21 }
 0x5b3   :  { %840 = vmatpush.msrb.mxu0 %v1880_v9  ;;  %977 = vmatpush.msra.mxu2 %v1945_v55 }
 0x5b5   :  { %841 = vmatpush.msrb.mxu0 %v1885_v10  ;;  %978 = vmatpush.msra.mxu2 %v1947_v56 }
 0x5b7   :  { %842 = vmatpush.msrb.mxu0 %v1897_v13  ;;  %979 = vmatpush.msra.mxu2 %v1955_v58 }
 0x5b9   :  { %843 = vmatpush.msrb.mxu0 %v1906_v15  ;;  %980 = vmatpush.msra.mxu2 %v1971_v61 }
 0x62b   :  { %v342_v22 = vpop.f32.mrf.mxu2 }
 0x62c   :  { %v343_v23 = vadd.f32 %v342_v22, %v2027_v4 }
 0x62f   :  { %v433_v24 = vpop.f32.mrf.mxu0 }
 0x630   :  { %v436_v25 = vadd.f32 %v433_v24, %v343_v23  ;;  %v553_v23 = vrot.slane %v2043_v8, 7 }
 0x632   :  { %v1523_v26 = vmul.f32 -1.442695, %v436_v25 }
 0x634   :  { %1590 = vpow2.f32 %v1523_v26 }
 0x635   :  { %v524_v27 = vpop.f32.mrf.mxu2 }
 0x636   :  { %v528_v29 = vrot.slane %v524_v27, 6 }
 0x638   :  { %v530_v30 = vadd.f32 %v528_v29, %v1930_v28 }
 0x63a   :  { %v1591_v31 = vpop.eup %1590  ;;  %v1526_v32 = vmul.f32 -1.442695, %v530_v30 }
 0x63b   :  { %v440_v33 = vadd.f32 1.0, %v1591_v31 }
 0x63c   :  { %1592 = vpow2.f32 %v1526_v32 }
 0x63d   :  { %1594 = vrcp.f32 %v440_v33  ;;  %v452_v39 = vand.u32 2147483648, %v440_v33  ;;  %v450_v42 = vand.u32 2147483647, %v440_v33  ;;  %vm446_vm6 = vweird.f32 %v440_v33 }
 0x63f   :  { %v453_v46 = vor.u32 1.1754944e-38, %v452_v39  ;;  %vm451_vm8 = vcmp.eq.f32.partialorder %v450_v42, 8.507059e+37 }
 0x642   :  { %v1593_v34 = vpop.eup %1592 }
 0x643   :  { %v1595_v35 = vpop.eup %1594  ;;  %v534_v36 = vadd.f32 1.0, %v1593_v34 }
 0x644   :  { %v442_v37 = vmul.f32 %v1595_v35, %v440_v33  ;;  %vm447_vm5 = vweird.f32 %v1595_v35 }
 0x645   :  { %1596 = vrcp.f32 %v534_v36  ;;  %vm448_vm7 = vmor %vm446_vm6, %vm447_vm5  ;;  %v546_v52 = vand.u32 2147483648, %v534_v36  ;;  %v544_v0 = vand.u32 2147483647, %v534_v36  ;;  %vm540_vm10 = vweird.f32 %v534_v36 }
 0x646   :  { %v443_v38 = vsub.f32 1.0, %v442_v37 }
 0x647   :  { %v547_v3 = vor.u32 1.1754944e-38, %v546_v52  ;;  %vm545_vm12 = vcmp.eq.f32.partialorder %v544_v0, 8.507059e+37 }
 0x648   :  { %v444_v40 = vmul.f32 %v1595_v35, %v443_v38 }
 0x64a   :  { %v445_v43 = vadd.f32 %v1595_v35, %v444_v40 }
 0x64b   :  { %v1597_v45 = vpop.eup %1596 }
 0x64c   :  { %v536_v47 = vmul.f32 %v1597_v45, %v534_v36  ;;  %v449_v48 = vsel %vm448_vm7, %v1595_v35, %v445_v43  ;;  %vm541_vm9 = vweird.f32 %v1597_v45 }
 0x64d   :  { %v454_v49 = vsel %vm451_vm8, %v453_v46, %v449_v48  ;;  %vm542_vm11 = vmor %vm540_vm10, %vm541_vm9 }
 0x64e   :  { %v537_v50 = vsub.f32 1.0, %v536_v47  ;;  %v456_v51 = vmul.f32 %v454_v49, %v1933_v41 }
 0x650   :  { %v457_v54 = vadd.f32 %v456_v51, %v1935_v44  ;;  %v538_v62 = vmul.f32 %v1597_v45, %v537_v50 }
 0x652   :  { %460 = vrot.lane.b32.xlu0 %v457_v54, %s1778_s2  ;;  %v539_v1 = vadd.f32 %v1597_v45, %v538_v62  ;;  %v458_v19 = vmul.f32 %v457_v54, %v2039_v2 }
 0x654   :  { %v543_v5 = vsel %vm542_vm11, %v1597_v45, %v539_v1 }
 0x655   :  { %v548_v6 = vsel %vm545_vm12, %v547_v3, %v543_v5 }
 0x656   :  { %v550_v7 = vmul.f32 %v548_v6, %v1933_v41 }
 0x658   :  { %v551_v11 = vadd.f32 %v550_v7, %v1935_v44 }
 0x65a   :  { %557 = vrot.lane.b32.xlu1 %v551_v11, %s1778_s2  ;;  %v555_v24 = vmul.f32 %v553_v23, %v551_v11 }
 0x6c4   :  { %v461_v12 = vpop.permute.xlu0 %460 }
 0x6c5   :  { %v463_v14 = vmul.f32 %v461_v12, %v457_v54 }
 0x6c7   :  { %465 = vrot.lane.b32.xlu2 %v463_v14, %s1776_s22 }
 0x6cc   :  { %v558_v16 = vpop.permute.xlu1 %557 }
 0x6cd   :  { %v560_v18 = vmul.f32 %v558_v16, %v551_v11 }
 0x6cf   :  { %562 = vrot.lane.b32.xlu0 %v560_v18, %s1776_s22 }
 0x721   :  { %v466_v20 = vpop.permute.xlu2 %465 }
 0x722   :  { %v2083_v21 = vadd.f32 %v466_v20, %v458_v19 }
 0x724   :  { %1598 = vtanh.f32 %v2083_v21 }
 0x72a   :  { %v1599_v22 = vpop.eup %1598 }
 0x72b   :  { %471 = vrot.lane.b32.xlu1 %v1599_v22, %s1778_s2 }
 0x741   :  { %v563_v25 = vpop.permute.xlu0 %562 }
 0x742   :  { %v2088_v26 = vadd.f32 %v563_v25, %v555_v24 }
 0x744   :  { %1600 = vtanh.f32 %v2088_v26 }
 0x74a   :  { %v1601_v27 = vpop.eup %1600 }
 0x74b   :  { %568 = vrot.lane.b32.xlu2 %v1601_v27, %s1778_s2 }
 0x79d   :  { %v472_v2 = vpop.permute.xlu1 %471 }
 0x79e   :  { %v2092_v29 = vmul.f32 %v472_v2, %v457_v54 }
 0x7a0   :  { %483 = vrot.lane.b32.xlu0 %v2092_v29, %s1776_s22 }
 0x7a5   :  { %v569_v30 = vpop.permute.xlu2 %568 }
 0x7a6   :  { %v571_v31 = vmul.f32 %v569_v30, %v551_v11 }
 0x7a8   :  { %v573_v32 = vrot.slane %v571_v31, 2 }
 0x7aa   :  { %574 = vrot.lane.b32.xlu1 %v573_v32, %s1776_s22 }
 0x812   :  { %v484_v8 = vpop.permute.xlu0 %483 }
 0x813   :  { %1524 = vmatmul.msk.f32.vlgmr.msra.gmra.mxu1 %vm125_vm1, %v484_v8  ;;  %v715_v8 = vrot.slane %v2088_v26, 7 }
 0x814   :  { %911 = vmatpush.msra.mxu1 %v1953_v57 }
 0x816   :  { %912 = vmatpush.msra.mxu1 %v1961_v59 }
 0x818   :  { %913 = vmatpush.msra.mxu1 %v1968_v60 }
 0x81a   :  { %914 = vmatpush.msra.mxu1 %v1982_v63 }
 0x81c   :  { %v575_v33 = vpop.permute.xlu1 %574 }
 0x81d   :  { %1527 = vmatmul.msk.f32.vlgmr.msra.gmra.mxu3 %vm125_vm1, %v575_v33  ;;  %1530 = vmatmul.msk.f32.vlgmr.msrb.gmra.mxu1 %vm125_vm1, %v575_v33 }
 0x81e   :  { %997 = vmatpush.msra.mxu3 %v1880_v9  ;;  %1136 = vmatpush.msrb.mxu1 %v1945_v55 }
 0x820   :  { %998 = vmatpush.msra.mxu3 %v1885_v10  ;;  %1137 = vmatpush.msrb.mxu1 %v1947_v56 }
 0x822   :  { %999 = vmatpush.msra.mxu3 %v1897_v13  ;;  %1138 = vmatpush.msrb.mxu1 %v1955_v58 }
 0x824   :  { %1000 = vmatpush.msra.mxu3 %v1906_v15  ;;  %1139 = vmatpush.msrb.mxu1 %v1971_v61 }
 0x890   :  { %v504_v34 = vpop.f32.mrf.mxu1 }
 0x891   :  { %v505_v38 = vadd.f32 %v504_v34, %v2027_v4 }
 0x89a   :  { %v686_v35 = vpop.f32.mrf.mxu1 }
 0x89b   :  { %v690_v36 = vrot.slane %v686_v35, 5 }
 0x89d   :  { %v692_v37 = vadd.f32 %v690_v36, %v1930_v28 }
 0x89f   :  { %v1531_v39 = vmul.f32 -1.442695, %v692_v37 }
 0x8a0   :  { %v595_v40 = vpop.f32.mrf.mxu3 }
 0x8a1   :  { %1602 = vpow2.f32 %v1531_v39  ;;  %v598_v42 = vadd.f32 %v595_v40, %v505_v38 }
 0x8a3   :  { %v1528_v43 = vmul.f32 -1.442695, %v598_v42 }
 0x8a5   :  { %1604 = vpow2.f32 %v1528_v43 }
 0x8a7   :  { %v1603_v45 = vpop.eup %1602 }
 0x8a8   :  { %v696_v46 = vadd.f32 1.0, %v1603_v45 }
 0x8aa   :  { %1606 = vrcp.f32 %v696_v46  ;;  %v706_v54 = vand.u32 2147483647, %v696_v46  ;;  %v708_v62 = vand.u32 2147483648, %v696_v46  ;;  %vm702_vm14 = vweird.f32 %v696_v46 }
 0x8ab   :  { %v1605_v47 = vpop.eup %1604 }
 0x8ac   :  { %v602_v48 = vadd.f32 1.0, %v1605_v47  ;;  %vm707_vm0 = vcmp.eq.f32.partialorder %v706_v54, 8.507059e+37  ;;  %v709_v6 = vor.u32 1.1754944e-38, %v708_v62 }
 0x8ae   :  { %1608 = vrcp.f32 %v602_v48  ;;  %v614_v7 = vand.u32 2147483648, %v602_v48  ;;  %v612_v14 = vand.u32 2147483647, %v602_v48  ;;  %vm608_vm3 = vweird.f32 %v602_v48 }
 0x8b0   :  { %v1607_v49 = vpop.eup %1606  ;;  %v615_v20 = vor.u32 1.1754944e-38, %v614_v7  ;;  %vm613_vm6 = vcmp.eq.f32.partialorder %v612_v14, 8.507059e+37 }
 0x8b1   :  { %v698_v50 = vmul.f32 %v1607_v49, %v696_v46  ;;  %vm703_vm13 = vweird.f32 %v1607_v49 }
 0x8b2   :  { %vm704_vm15 = vmor %vm702_vm14, %vm703_vm13 }
 0x8b3   :  { %v699_v51 = vsub.f32 1.0, %v698_v50 }
 0x8b4   :  { %v1609_v52 = vpop.eup %1608 }
 0x8b5   :  { %v604_v0 = vmul.f32 %v1609_v52, %v602_v48  ;;  %v700_v1 = vmul.f32 %v1607_v49, %v699_v51  ;;  %vm609_vm2 = vweird.f32 %v1609_v52 }
 0x8b6   :  { %vm610_vm5 = vmor %vm608_vm3, %vm609_vm2 }
 0x8b7   :  { %v605_v3 = vsub.f32 1.0, %v604_v0  ;;  %v701_v5 = vadd.f32 %v1607_v49, %v700_v1 }
 0x8b9   :  { %v606_v11 = vmul.f32 %v1609_v52, %v605_v3  ;;  %v705_v12 = vsel %vm704_vm15, %v1607_v49, %v701_v5 }
 0x8ba   :  { %v710_v16 = vsel %vm707_vm0, %v709_v6, %v705_v12 }
 0x8bb   :  { %v712_v18 = vmul.f32 %v710_v16, %v1933_v41  ;;  %v607_v19 = vadd.f32 %v1609_v52, %v606_v11 }
 0x8bd   :  { %v713_v22 = vadd.f32 %v712_v18, %v1935_v44  ;;  %v611_v23 = vsel %vm610_vm5, %v1609_v52, %v607_v19 }
 0x8be   :  { %v616_v24 = vsel %vm613_vm6, %v615_v20, %v611_v23 }
 0x8bf   :  { %719 = vrot.lane.b32.xlu2 %v713_v22, %s1778_s2  ;;  %v618_v25 = vmul.f32 %v616_v24, %v1933_v41  ;;  %v717_v33 = vmul.f32 %v715_v8, %v713_v22 }
 0x8c1   :  { %v619_v27 = vadd.f32 %v618_v25, %v1935_v44 }
 0x8c3   :  { %622 = vrot.lane.b32.xlu0 %v619_v27, %s1778_s2  ;;  %v620_v36 = vmul.f32 %v619_v27, %v2083_v21 }
 0x919   :  { %v720_v2 = vpop.permute.xlu2 %719 }
 0x91a   :  { %v722_v30 = vmul.f32 %v720_v2, %v713_v22 }
 0x91c   :  { %724 = vrot.lane.b32.xlu1 %v722_v30, %s1776_s22 }
 0x935   :  { %v623_v31 = vpop.permute.xlu0 %622 }
 0x936   :  { %v625_v32 = vmul.f32 %v623_v31, %v619_v27 }
 0x938   :  { %627 = vrot.lane.b32.xlu2 %v625_v32, %s1776_s22 }
 0x98e   :  { %v725_v34 = vpop.permute.xlu1 %724 }
 0x98f   :  { %v2123_v35 = vadd.f32 %v725_v34, %v717_v33 }
 0x991   :  { %1610 = vtanh.f32 %v2123_v35 }
 0x992   :  { %v628_v37 = vpop.permute.xlu2 %627 }
 0x993   :  { %v2127_v38 = vadd.f32 %v628_v37, %v620_v36 }
 0x995   :  { %1612 = vtanh.f32 %v2127_v38 }
 0x997   :  { %v1611_v39 = vpop.eup %1610 }
 0x998   :  { %730 = vrot.lane.b32.xlu0 %v1611_v39, %s1778_s2 }
 0x99b   :  { %v1613_v40 = vpop.eup %1612 }
 0x99c   :  { %633 = vrot.lane.b32.xlu1 %v1613_v40, %s1778_s2 }
 0xa0a   :  { %v731_v26 = vpop.permute.xlu0 %730 }
 0xa0b   :  { %v733_v42 = vmul.f32 %v731_v26, %v713_v22 }
 0xa0d   :  { %v735_v43 = vrot.slane %v733_v42, 3  ;;  %v874_v42 = vrot.slane %v2123_v35, 7 }
 0xa0e   :  { %v634_v45 = vpop.permute.xlu1 %633 }
 0xa0f   :  { %v2132_v46 = vmul.f32 %v634_v45, %v619_v27  ;;  %736 = vrot.lane.b32.xlu2 %v735_v43, %s1776_s22 }
 0xa11   :  { %645 = vrot.lane.b32.xlu0 %v2132_v46, %s1776_s22 }
 0xa69   :  { %v737_v21 = vpop.permute.xlu2 %736 }
 0xa6a   :  { %1532 = vmatmul.msk.f32.vlgmr.msrb.gmra.mxu2 %vm125_vm1, %v737_v21 }
 0xa6b   :  { %1156 = vmatpush.msrb.mxu2 %v1880_v9 }
 0xa6d   :  { %1157 = vmatpush.msrb.mxu2 %v1885_v10 }
 0xa6f   :  { %1158 = vmatpush.msrb.mxu2 %v1897_v13 }
 0xa71   :  { %1159 = vmatpush.msrb.mxu2 %v1906_v15 }
 0xa83   :  { %v646_v47 = vpop.permute.xlu0 %645 }
 0xa84   :  { %1529 = vmatmul.msk.f32.vlgmr.msra.gmra.mxu0 %vm125_vm1, %v646_v47 }
 0xa85   :  { %1068 = vmatpush.msra.mxu0 %v1953_v57 }
 0xa87   :  { %1069 = vmatpush.msra.mxu0 %v1961_v59 }
 0xa89   :  { %1070 = vmatpush.msra.mxu0 %v1968_v60 }
 0xa8b   :  { %1071 = vmatpush.msra.mxu0 %v1982_v63 }
 0xa8c   :  { %1535 = vmatmul.msk.f32.vlgmr.msrb.gmra.mxu0 %vm125_vm1, %v737_v21 }
 0xa8d   :  { %1295 = vmatpush.msrb.mxu0 %v1945_v55 }
 0xa8f   :  { %1296 = vmatpush.msrb.mxu0 %v1947_v56 }
 0xa91   :  { %1297 = vmatpush.msrb.mxu0 %v1955_v58 }
 0xa93   :  { %1298 = vmatpush.msrb.mxu0 %v1971_v61 }
 0xaed   :  { %v757_v50 = vpop.f32.mrf.mxu2 }
 0xb01   :  { %v666_v48 = vpop.f32.mrf.mxu0 }
 0xb02   :  { %v667_v49 = vadd.f32 %v666_v48, %v2027_v4 }
 0xb04   :  { %v760_v51 = vadd.f32 %v757_v50, %v667_v49 }
 0xb06   :  { %v1533_v52 = vmul.f32 -1.442695, %v760_v51 }
 0xb08   :  { %1614 = vpow2.f32 %v1533_v52 }
 0xb09   :  { %v845_v54 = vpop.f32.mrf.mxu0 }
 0xb0a   :  { %v849_v62 = vrot.slane %v845_v54, 4 }
 0xb0c   :  { %v851_v0 = vadd.f32 %v849_v62, %v1930_v28 }
 0xb0e   :  { %v1615_v1 = vpop.eup %1614  ;;  %v1536_v3 = vmul.f32 -1.442695, %v851_v0 }
 0xb0f   :  { %v764_v55 = vadd.f32 1.0, %v1615_v1 }
 0xb10   :  { %1616 = vpow2.f32 %v1536_v3 }
 0xb11   :  { %1618 = vrcp.f32 %v764_v55  ;;  %v776_v7 = vand.u32 2147483648, %v764_v55  ;;  %v774_v12 = vand.u32 2147483647, %v764_v55  ;;  %vm770_vm8 = vweird.f32 %v764_v55 }
 0xb13   :  { %v777_v18 = vor.u32 1.1754944e-38, %v776_v7  ;;  %vm775_vm10 = vcmp.eq.f32.partialorder %v774_v12, 8.507059e+37 }
 0xb16   :  { %v1617_v56 = vpop.eup %1616 }
 0xb17   :  { %v1619_v58 = vpop.eup %1618  ;;  %v855_v5 = vadd.f32 1.0, %v1617_v56 }
 0xb18   :  { %v766_v61 = vmul.f32 %v1619_v58, %v764_v55  ;;  %vm771_vm7 = vweird.f32 %v1619_v58 }
 0xb19   :  { %1620 = vrcp.f32 %v855_v5  ;;  %vm772_vm9 = vmor %vm770_vm8, %vm771_vm7  ;;  %v867_v25 = vand.u32 2147483648, %v855_v5  ;;  %v865_v30 = vand.u32 2147483647, %v855_v5  ;;  %vm861_vm12 = vweird.f32 %v855_v5 }
 0xb1a   :  { %v767_v6 = vsub.f32 1.0, %v766_v61 }
 0xb1b   :  { %v868_v32 = vor.u32 1.1754944e-38, %v867_v25  ;;  %vm866_vm14 = vcmp.eq.f32.partialorder %v865_v30, 8.507059e+37 }
 0xb1c   :  { %v768_v11 = vmul.f32 %v1619_v58, %v767_v6 }
 0xb1e   :  { %v769_v14 = vadd.f32 %v1619_v58, %v768_v11 }
 0xb1f   :  { %v1621_v16 = vpop.eup %1620 }
 0xb20   :  { %v857_v19 = vmul.f32 %v1621_v16, %v855_v5  ;;  %v773_v20 = vsel %vm772_vm9, %v1619_v58, %v769_v14  ;;  %vm862_vm11 = vweird.f32 %v1621_v16 }
 0xb21   :  { %v778_v22 = vsel %vm775_vm10, %v777_v18, %v773_v20  ;;  %vm863_vm13 = vmor %vm861_vm12, %vm862_vm11 }
 0xb22   :  { %v858_v23 = vsub.f32 1.0, %v857_v19  ;;  %v780_v24 = vmul.f32 %v778_v22, %v1933_v41 }
 0xb24   :  { %v781_v27 = vadd.f32 %v780_v24, %v1935_v44  ;;  %v859_v2 = vmul.f32 %v1621_v16, %v858_v23 }
 0xb26   :  { %784 = vrot.lane.b32.xlu1 %v781_v27, %s1778_s2  ;;  %v860_v31 = vadd.f32 %v1621_v16, %v859_v2  ;;  %v782_v48 = vmul.f32 %v781_v27, %v2127_v38 }
 0xb28   :  { %v864_v8 = vsel %vm863_vm13, %v1621_v16, %v860_v31 }
 0xb29   :  { %v869_v33 = vsel %vm866_vm14, %v868_v32, %v864_v8 }
 0xb2a   :  { %v871_v34 = vmul.f32 %v869_v33, %v1933_v41 }
 0xb2c   :  { %v872_v36 = vadd.f32 %v871_v34, %v1935_v44 }
 0xb2e   :  { %878 = vrot.lane.b32.xlu2 %v872_v36, %s1778_s2  ;;  %v876_v43 = vmul.f32 %v874_v42, %v872_v36 }
 0xb88   :  { %v879_v37 = vpop.permute.xlu2 %878 }
 0xb89   :  { %v881_v39 = vmul.f32 %v879_v37, %v872_v36 }
 0xb8b   :  { %883 = vrot.lane.b32.xlu1 %v881_v39, %s1776_s22 }
 0xb98   :  { %v785_v40 = vpop.permute.xlu1 %784 }
 0xb99   :  { %v787_v26 = vmul.f32 %v785_v40, %v781_v27 }
 0xb9b   :  { %789 = vrot.lane.b32.xlu0 %v787_v26, %s1776_s22 }
 0xbfd   :  { %v884_v45 = vpop.permute.xlu1 %883 }
 0xbfe   :  { %v2163_v21 = vadd.f32 %v884_v45, %v876_v43 }
 0xc00   :  { %1622 = vtanh.f32 %v2163_v21 }
 0xc06   :  { %v1623_v47 = vpop.eup %1622 }
 0xc07   :  { %889 = vrot.lane.b32.xlu0 %v1623_v47, %s1778_s2 }
 0xc0d   :  { %v790_v49 = vpop.permute.xlu0 %789 }
 0xc0e   :  { %v2168_v50 = vadd.f32 %v790_v49, %v782_v48 }
 0xc10   :  { %1624 = vtanh.f32 %v2168_v50 }
 0xc16   :  { %v1625_v51 = vpop.eup %1624 }
 0xc17   :  { %795 = vrot.lane.b32.xlu2 %v1625_v51, %s1778_s2 }
 0xc71   :  { %v796_v35 = vpop.permute.xlu2 %795 }
 0xc72   :  { %v2172_v52 = vmul.f32 %v796_v35, %v781_v27 }
 0xc74   :  { %804 = vrot.lane.b32.xlu1 %v2172_v52, %s1776_s22 }
 0xc79   :  { %v890_v54 = vpop.permute.xlu0 %889 }
 0xc7a   :  { %v892_v62 = vmul.f32 %v890_v54, %v872_v36 }
 0xc7c   :  { %v894_v0 = vrot.slane %v892_v62, 4  ;;  %v1031_v62 = vrot.slane %v2163_v21, 7 }
 0xc7e   :  { %895 = vrot.lane.b32.xlu2 %v894_v0, %s1776_s22 }
 0xcd8   :  { %v896_v38 = vpop.permute.xlu2 %895 }
 0xcd9   :  { %1537 = vmatmul.msk.f32.vlgmr.msra.gmra.mxu1 %vm125_vm1, %v896_v38 }
 0xcda   :  { %1315 = vmatpush.msra.mxu1 %v1880_v9 }
 0xcdc   :  { %1316 = vmatpush.msra.mxu1 %v1885_v10 }
 0xcde   :  { %1317 = vmatpush.msra.mxu1 %v1897_v13 }
 0xce0   :  { %1318 = vmatpush.msra.mxu1 %v1906_v15 }
 0xce6   :  { %v805_v1 = vpop.permute.xlu1 %804 }
 0xce7   :  { %1534 = vmatmul.msk.f32.vlgmr.msrb.gmra.mxu3 %vm125_vm1, %v805_v1 }
 0xce8   :  { %1227 = vmatpush.msrb.mxu3 %v1953_v57 }
 0xcea   :  { %1228 = vmatpush.msrb.mxu3 %v1961_v59 }
 0xcec   :  { %1229 = vmatpush.msrb.mxu3 %v1968_v60 }
 0xcee   :  { %1230 = vmatpush.msrb.mxu3 %v1982_v63 }
 0xcef   :  { %1540 = vmatmul.msk.f32.vlgmr.msra.gmra.mxu3 %vm125_vm1, %v896_v38 }
 0xd56   :  { %v916_v3 = vpop.f32.mrf.mxu1 }
 0xd6a   :  { %v825_v9 = vpop.f32.mrf.mxu3 }
 0xd6b   :  { %v826_v10 = vadd.f32 %v825_v9, %v2027_v4 }
 0xd6d   :  { %v919_v13 = vadd.f32 %v916_v3, %v826_v10 }
 0xd6f   :  { %v1538_v55 = vmul.f32 -1.442695, %v919_v13 }
 0xd71   :  { %1626 = vpow2.f32 %v1538_v55 }
 0xd72   :  { %v1002_v15 = vpop.f32.mrf.mxu3 }
 0xd73   :  { %v1006_v56 = vrot.slane %v1002_v15, 3 }
 0xd75   :  { %v1008_v58 = vadd.f32 %v1006_v56, %v1930_v28 }
 0xd77   :  { %v1627_v5 = vpop.eup %1626  ;;  %v1541_v61 = vmul.f32 -1.442695, %v1008_v58 }
 0xd78   :  { %v923_v6 = vadd.f32 1.0, %v1627_v5 }
 0xd79   :  { %1628 = vpow2.f32 %v1541_v61 }
 0xd7a   :  { %1630 = vrcp.f32 %v923_v6  ;;  %v935_v18 = vand.u32 2147483648, %v923_v6  ;;  %v933_v20 = vand.u32 2147483647, %v923_v6  ;;  %vm929_vm0 = vweird.f32 %v923_v6 }
 0xd7c   :  { %v936_v24 = vor.u32 1.1754944e-38, %v935_v18  ;;  %vm934_vm3 = vcmp.eq.f32.partialorder %v933_v20, 8.507059e+37 }
 0xd7f   :  { %v1629_v7 = vpop.eup %1628 }
 0xd80   :  { %v1631_v11 = vpop.eup %1630  ;;  %v1012_v12 = vadd.f32 1.0, %v1629_v7 }
 0xd81   :  { %v925_v14 = vmul.f32 %v1631_v11, %v923_v6  ;;  %vm930_vm15 = vweird.f32 %v1631_v11 }
 0xd82   :  { %1632 = vrcp.f32 %v1012_v12  ;;  %vm931_vm2 = vmor %vm929_vm0, %vm930_vm15  ;;  %v1024_v32 = vand.u32 2147483648, %v1012_v12  ;;  %v1022_v34 = vand.u32 2147483647, %v1012_v12  ;;  %vm1018_vm6 = vweird.f32 %v1012_v12 }
 0xd83   :  { %v926_v16 = vsub.f32 1.0, %v925_v14 }
 0xd84   :  { %v1025_v37 = vor.u32 1.1754944e-38, %v1024_v32  ;;  %vm1023_vm8 = vcmp.eq.f32.partialorder %v1022_v34, 8.507059e+37 }
 0xd85   :  { %v927_v19 = vmul.f32 %v1631_v11, %v926_v16 }
 0xd87   :  { %v928_v22 = vadd.f32 %v1631_v11, %v927_v19 }
 0xd88   :  { %v1633_v23 = vpop.eup %1632 }
 0xd89   :  { %v1014_v25 = vmul.f32 %v1633_v23, %v1012_v12  ;;  %v932_v27 = vsel %vm931_vm2, %v1631_v11, %v928_v22  ;;  %vm1019_vm5 = vweird.f32 %v1633_v23 }
 0xd8a   :  { %v937_v2 = vsel %vm934_vm3, %v936_v24, %v932_v27  ;;  %vm1020_vm7 = vmor %vm1018_vm6, %vm1019_vm5 }
 0xd8b   :  { %v1015_v30 = vsub.f32 1.0, %v1014_v25  ;;  %v939_v31 = vmul.f32 %v937_v2, %v1933_v41 }
 0xd8d   :  { %v940_v8 = vadd.f32 %v939_v31, %v1935_v44  ;;  %v1016_v33 = vmul.f32 %v1633_v23, %v1015_v30 }
 0xd8f   :  { %943 = vrot.lane.b32.xlu0 %v940_v8, %s1778_s2  ;;  %v1017_v36 = vadd.f32 %v1633_v23, %v1016_v33  ;;  %v941_v49 = vmul.f32 %v940_v8, %v2168_v50 }
 0xd91   :  { %v1021_v39 = vsel %vm1020_vm7, %v1633_v23, %v1017_v36 }
 0xd92   :  { %v1026_v40 = vsel %vm1023_vm8, %v1025_v37, %v1021_v39 }
 0xd93   :  { %v1028_v26 = vmul.f32 %v1026_v40, %v1933_v41 }
 0xd95   :  { %v1029_v42 = vadd.f32 %v1028_v26, %v1935_v44 }
 0xd97   :  { %1035 = vrot.lane.b32.xlu1 %v1029_v42, %s1778_s2  ;;  %v1033_v0 = vmul.f32 %v1031_v62, %v1029_v42 }
 0xe01   :  { %v944_v43 = vpop.permute.xlu0 %943 }
 0xe02   :  { %v946_v45 = vmul.f32 %v944_v43, %v940_v8 }
 0xe04   :  { %948 = vrot.lane.b32.xlu2 %v946_v45, %s1776_s22 }
 0xe09   :  { %v1036_v47 = vpop.permute.xlu1 %1035 }
 0xe0a   :  { %v1038_v48 = vmul.f32 %v1036_v47, %v1029_v42 }
 0xe0c   :  { %1040 = vrot.lane.b32.xlu0 %v1038_v48, %s1776_s22 }
 0xe5e   :  { %v949_v51 = vpop.permute.xlu2 %948 }
 0xe5f   :  { %v2199_v35 = vadd.f32 %v949_v51, %v941_v49 }
 0xe61   :  { %1634 = vtanh.f32 %v2199_v35 }
 0xe67   :  { %v1635_v54 = vpop.eup %1634 }
 0xe68   :  { %954 = vrot.lane.b32.xlu1 %v1635_v54, %s1778_s2 }
 0xe7e   :  { %v1041_v38 = vpop.permute.xlu0 %1040 }
 0xe7f   :  { %v2204_v1 = vadd.f32 %v1041_v38, %v1033_v0 }
 0xe81   :  { %1636 = vtanh.f32 %v2204_v1  ;;  %v1190_v62 = vrot.slane %v2204_v1, 7 }
 0xe87   :  { %v1637_v9 = vpop.eup %1636 }
 0xe88   :  { %1046 = vrot.lane.b32.xlu2 %v1637_v9, %s1778_s2 }
 0xeda   :  { %v955_v50 = vpop.permute.xlu1 %954 }
 0xedb   :  { %v957_v10 = vmul.f32 %v955_v50, %v940_v8 }
 0xedd   :  { %959 = vrot.lane.b32.xlu0 %v957_v10, %s1776_s22 }
 0xee2   :  { %v1047_v3 = vpop.permute.xlu2 %1046 }
 0xee3   :  { %v1049_v13 = vmul.f32 %v1047_v3, %v1029_v42 }
 0xee5   :  { %v1051_v55 = vrot.slane %v1049_v13, 5 }
 0xee7   :  { %1052 = vrot.lane.b32.xlu1 %v1051_v55, %s1776_s22 }
 0xf4f   :  { %v960_v15 = vpop.permute.xlu0 %959 }
 0xf50   :  { %962 = vst.msk [vmem:[#allocation5 + $0x1] sm:$0x1] %vm2051_vm4, %v960_v15  ;;  %1539 = vmatmul.msk.f32.vlgmr.msra.gmra.mxu2 %vm125_vm1, %v960_v15 }
 0xf51   :  { %1386 = vmatpush.msra.mxu2 %v1953_v57 }
 0xf53   :  { %1387 = vmatpush.msra.mxu2 %v1961_v59 }
 0xf55   :  { %1388 = vmatpush.msra.mxu2 %v1968_v60 }
 0xf57   :  { %1389 = vmatpush.msra.mxu2 %v1982_v63 }
 0xf59   :  { %v1053_v21 = vpop.permute.xlu1 %1052 }
 0xf5a   :  { %1542 = vmatmul.msk.f32.vlgmr.msra.gmra.mxu0 %vm125_vm1, %v1053_v21  ;;  %1545 = vmatmul.msk.f32.vlgmr.msrb.gmra.mxu2 %vm125_vm1, %v1053_v21 }
 0xfd3   :  { %v982_v56 = vpop.f32.mrf.mxu2 }
 0xfd4   :  { %v983_v58 = vadd.f32 %v982_v56, %v2027_v4 }
 0xfd7   :  { %v1073_v53 = vpop.f32.mrf.mxu0 }
 0xfd8   :  { %v1076_v5 = vadd.f32 %v1073_v53, %v983_v58 }
 0xfda   :  { %v1543_v61 = vmul.f32 -1.442695, %v1076_v5 }
 0xfdc   :  { %1638 = vpow2.f32 %v1543_v61  ;;  %v2251_v61 = vld [vmem:[%s2360_s7] sm:$0x1]  ;;  %s1779_s7 = smov 96  }
 0xfdd   :  { %v1161_v6 = vpop.f32.mrf.mxu2 }
 0xfde   :  { %v1165_v57 = vrot.slane %v1161_v6, 2 }
 0xfe0   :  { %v1167_v59 = vadd.f32 %v1165_v57, %v1930_v28 }
 0xfe2   :  { %v1639_v7 = vpop.eup %1638  ;;  %v1546_v60 = vmul.f32 -1.442695, %v1167_v59 }
 0xfe3   :  { %v1080_v11 = vadd.f32 1.0, %v1639_v7 }
 0xfe4   :  { %1640 = vpow2.f32 %v1546_v60 }
 0xfe5   :  { %1642 = vrcp.f32 %v1080_v11  ;;  %v1092_v4 = vand.u32 2147483648, %v1080_v11  ;;  %v1090_v20 = vand.u32 2147483647, %v1080_v11  ;;  %vm1086_vm9 = vweird.f32 %v1080_v11 }
 0xfe7   :  { %v1093_v24 = vor.u32 1.1754944e-38, %v1092_v4  ;;  %vm1091_vm11 = vcmp.eq.f32.partialorder %v1090_v20, 8.507059e+37 }
 0xfea   :  { %v1641_v63 = vpop.eup %1640 }
 0xfeb   :  { %v1643_v12 = vpop.eup %1642  ;;  %v1171_v14 = vadd.f32 1.0, %v1641_v63 }
 0xfec   :  { %v1082_v16 = vmul.f32 %v1643_v12, %v1080_v11  ;;  %vm1087_vm4 = vweird.f32 %v1643_v12 }
 0xfed   :  { %1644 = vrcp.f32 %v1171_v14  ;;  %vm1088_vm10 = vmor %vm1086_vm9, %vm1087_vm4  ;;  %v1183_v32 = vand.u32 2147483648, %v1171_v14  ;;  %v1181_v34 = vand.u32 2147483647, %v1171_v14  ;;  %vm1177_vm13 = vweird.f32 %v1171_v14 }
 0xfee   :  { %v1083_v18 = vsub.f32 1.0, %v1082_v16 }
 0xfef   :  { %v1184_v37 = vor.u32 1.1754944e-38, %v1183_v32  ;;  %vm1182_vm15 = vcmp.eq.f32.partialorder %v1181_v34, 8.507059e+37 }
 0xff0   :  { %v1084_v19 = vmul.f32 %v1643_v12, %v1083_v18 }
 0xff2   :  { %v1085_v22 = vadd.f32 %v1643_v12, %v1084_v19 }
 0xff3   :  { %v1645_v23 = vpop.eup %1644 }
 0xff4   :  { %v1173_v25 = vmul.f32 %v1645_v23, %v1171_v14  ;;  %v1089_v27 = vsel %vm1088_vm10, %v1643_v12, %v1085_v22  ;;  %vm1178_vm12 = vweird.f32 %v1645_v23 }
 0xff5   :  { %v1094_v2 = vsel %vm1091_vm11, %v1093_v24, %v1089_v27  ;;  %vm1179_vm14 = vmor %vm1177_vm13, %vm1178_vm12  ;;  %vm2283_vm12 = vcmp.ge.s32.totalorder %v74_v17, 32  ;;  %vm2288_vm13 = vcmp.lt.s32.totalorder %v74_v17, 64 }
 0xff6   :  { %v1174_v30 = vsub.f32 1.0, %v1173_v25  ;;  %v1096_v31 = vmul.f32 %v1094_v2, %v1933_v41 }
 0xff8   :  { %v1097_v8 = vadd.f32 %v1096_v31, %v1935_v44  ;;  %v1175_v33 = vmul.f32 %v1645_v23, %v1174_v30 }
 0xffa   :  { %1100 = vrot.lane.b32.xlu2 %v1097_v8, %s1778_s2  ;;  %v1176_v36 = vadd.f32 %v1645_v23, %v1175_v33  ;;  %v1098_v49 = vmul.f32 %v1097_v8, %v2199_v35 }
 0xffc   :  { %v1180_v39 = vsel %vm1179_vm14, %v1645_v23, %v1176_v36  ;;  %vm481_vm14 = vmand %vm2283_vm12, %vm2288_vm13 }
 0xffd   :  { %v1185_v40 = vsel %vm1182_vm15, %v1184_v37, %v1180_v39  ;;  %vm1437_vm15 = vcmask 261127  }
 0xffe   :  { %v1187_v26 = vmul.f32 %v1185_v40, %v1933_v41 }
0x1000   :  { %v1188_v42 = vadd.f32 %v1187_v26, %v1935_v44 }
0x1002   :  { %1194 = vrot.lane.b32.xlu0 %v1188_v42, %s1778_s2  ;;  %v1192_v0 = vmul.f32 %v1190_v62, %v1188_v42 }
0x1054   :  { %v1101_v43 = vpop.permute.xlu2 %1100 }
0x1055   :  { %v1103_v45 = vmul.f32 %v1101_v43, %v1097_v8 }
0x1057   :  { %1105 = vrot.lane.b32.xlu1 %v1103_v45, %s1776_s22 }
0x1074   :  { %v1195_v47 = vpop.permute.xlu0 %1194 }
0x1075   :  { %v1197_v48 = vmul.f32 %v1195_v47, %v1188_v42 }
0x1077   :  { %1199 = vrot.lane.b32.xlu2 %v1197_v48, %s1776_s22 }
0x10c9   :  { %v1106_v51 = vpop.permute.xlu1 %1105 }
0x10ca   :  { %v2230_v54 = vadd.f32 %v1106_v51, %v1098_v49 }
0x10cc   :  { %1646 = vtanh.f32 %v2230_v54 }
0x10d1   :  { %v1200_v38 = vpop.permute.xlu2 %1199 }
0x10d2   :  { %v1647_v9 = vpop.eup %1646  ;;  %v2234_v50 = vadd.f32 %v1200_v38, %v1192_v0 }
0x10d3   :  { %1111 = vrot.lane.b32.xlu0 %v1647_v9, %s1778_s2 }
0x10d4   :  { %1648 = vtanh.f32 %v2234_v50  ;;  %v1349_v38 = vrot.slane %v2234_v50, 7 }
0x10da   :  { %v1649_v10 = vpop.eup %1648 }
0x10db   :  { %1205 = vrot.lane.b32.xlu1 %v1649_v10, %s1778_s2 }
0x1145   :  { %v1112_v35 = vpop.permute.xlu0 %1111 }
0x1146   :  { %v2239_v3 = vmul.f32 %v1112_v35, %v1097_v8 }
0x1148   :  { %1120 = vrot.lane.b32.xlu2 %v2239_v3, %s1776_s22 }
0x114d   :  { %v1206_v13 = vpop.permute.xlu1 %1205 }
0x114e   :  { %v1208_v1 = vmul.f32 %v1206_v13, %v1188_v42 }
0x1150   :  { %v1210_v55 = vrot.slane %v1208_v1, 6 }
0x1152   :  { %1211 = vrot.lane.b32.xlu0 %v1210_v55, %s1776_s22 }
0x11a2   :  { %v1121_v15 = vpop.permute.xlu2 %1120 }
0x11a3   :  { %1544 = vmatmul.msk.f32.vlgmr.msrb.gmra.mxu1 %vm125_vm1, %v1121_v15 }
0x11c4   :  { %v1212_v21 = vpop.permute.xlu0 %1211 }
0x11c5   :  { %1547 = vmatmul.msk.f32.vlgmr.msrb.gmra.mxu3 %vm125_vm1, %v1212_v21  ;;  %1550 = vmatmul.msk.f32.vlgmr.msra.gmra.mxu1 %vm125_vm1, %v1212_v21 }
0x1220   :  { %v1141_v56 = vpop.f32.mrf.mxu1 }
0x1221   :  { %v1142_v6 = vadd.f32 %v2251_v61, %v1141_v56 }
0x1242   :  { %v1320_v58 = vpop.f32.mrf.mxu1 }
0x1243   :  { %v1324_v53 = vrot.slane %v1320_v58, 1 }
0x1245   :  { %v1326_v5 = vadd.f32 %v1324_v53, %v1930_v28 }
0x1247   :  { %v1551_v57 = vmul.f32 -1.442695, %v1326_v5 }
0x1248   :  { %v1232_v59 = vpop.f32.mrf.mxu3 }
0x1249   :  { %1650 = vpow2.f32 %v1551_v57  ;;  %v1235_v7 = vadd.f32 %v1232_v59, %v1142_v6 }
0x124b   :  { %v1548_v60 = vmul.f32 -1.442695, %v1235_v7 }
0x124d   :  { %1652 = vpow2.f32 %v1548_v60 }
0x124f   :  { %v1651_v11 = vpop.eup %1650 }
0x1250   :  { %v1330_v63 = vadd.f32 1.0, %v1651_v11 }
0x1252   :  { %1654 = vrcp.f32 %v1330_v63  ;;  %v1340_v19 = vand.u32 2147483647, %v1330_v63  ;;  %v1342_v20 = vand.u32 2147483648, %v1330_v63  ;;  %vm1336_vm2 = vweird.f32 %v1330_v63 }
0x1253   :  { %v1653_v12 = vpop.eup %1652 }
0x1254   :  { %v1239_v14 = vadd.f32 1.0, %v1653_v12  ;;  %vm1341_vm5 = vcmp.eq.f32.partialorder %v1340_v19, 8.507059e+37  ;;  %v1343_v27 = vor.u32 1.1754944e-38, %v1342_v20 }
0x1256   :  { %1656 = vrcp.f32 %v1239_v14  ;;  %v1251_v2 = vand.u32 2147483648, %v1239_v14  ;;  %v1249_v32 = vand.u32 2147483647, %v1239_v14  ;;  %vm1245_vm7 = vweird.f32 %v1239_v14 }
0x1258   :  { %v1655_v28 = vpop.eup %1654  ;;  %v1252_v36 = vor.u32 1.1754944e-38, %v1251_v2  ;;  %vm1250_vm4 = vcmp.eq.f32.partialorder %v1249_v32, 8.507059e+37 }
0x1259   :  { %v1332_v16 = vmul.f32 %v1655_v28, %v1330_v63  ;;  %vm1337_vm0 = vweird.f32 %v1655_v28 }
0x125a   :  { %vm1338_vm3 = vmor %vm1336_vm2, %vm1337_vm0  ;;  %vm2308_vm0 = vcmp.ge.s32.totalorder %v74_v17, 64  ;;  %vm2313_vm2 = vcmp.lt.s32.totalorder %v74_v17, 96 }
0x125b   :  { %v1333_v18 = vsub.f32 1.0, %v1332_v16 }
0x125c   :  { %v1657_v4 = vpop.eup %1656 }
0x125d   :  { %v1241_v22 = vmul.f32 %v1657_v4, %v1239_v14  ;;  %v1334_v23 = vmul.f32 %v1655_v28, %v1333_v18  ;;  %vm1246_vm6 = vweird.f32 %v1657_v4 }
0x125e   :  { %vm1247_vm8 = vmor %vm1245_vm7, %vm1246_vm6  ;;  %vm800_vm6 = vcmp.lt.s32.totalorder %v74_v17, 128 }
0x125f   :  { %v1242_v24 = vsub.f32 1.0, %v1241_v22  ;;  %v1335_v25 = vadd.f32 %v1655_v28, %v1334_v23 }
0x1261   :  { %v1243_v30 = vmul.f32 %v1657_v4, %v1242_v24  ;;  %v1339_v31 = vsel %vm1338_vm3, %v1655_v28, %v1335_v25  ;;  %vm643_vm3 = vmand %vm2308_vm0, %vm2313_vm2 }
0x1262   :  { %v1344_v8 = vsel %vm1341_vm5, %v1343_v27, %v1339_v31  ;;  %vm799_vm5 = vcmp.ge.s32.totalorder %v74_v17, 96 }
0x1263   :  { %v1346_v33 = vmul.f32 %v1344_v8, %v1933_v41  ;;  %v1244_v34 = vadd.f32 %v1657_v4, %v1243_v30  ;;  %vm801_vm7 = vmand %vm799_vm5, %vm800_vm6 }
0x1265   :  { %v1347_v37 = vadd.f32 %v1346_v33, %v1935_v44  ;;  %v1248_v39 = vsel %vm1247_vm8, %v1657_v4, %v1244_v34  ;;  %vm1444_vm8 = vcmask 253952  }
0x1266   :  { %v1253_v40 = vsel %vm1250_vm4, %v1252_v36, %v1248_v39 }
0x1267   :  { %1353 = vrot.lane.b32.xlu1 %v1347_v37, %s1778_s2  ;;  %v1255_v26 = vmul.f32 %v1253_v40, %v1933_v41  ;;  %v1351_v9 = vmul.f32 %v1349_v38, %v1347_v37 }
0x1269   :  { %v1256_v42 = vadd.f32 %v1255_v26, %v1935_v44 }
0x126b   :  { %1259 = vrot.lane.b32.xlu2 %v1256_v42, %s1778_s2  ;;  %v1257_v49 = vmul.f32 %v1256_v42, %v2230_v54 }
0x12c5   :  { %v1260_v43 = vpop.permute.xlu2 %1259 }
0x12c6   :  { %v1262_v45 = vmul.f32 %v1260_v43, %v1256_v42 }
0x12c8   :  { %1264 = vrot.lane.b32.xlu1 %v1262_v45, %s1776_s22 }
0x12d9   :  { %v1354_v47 = vpop.permute.xlu1 %1353 }
0x12da   :  { %v1356_v48 = vmul.f32 %v1354_v47, %v1347_v37 }
0x12dc   :  { %1358 = vrot.lane.b32.xlu0 %v1356_v48, %s1776_s22 }
0x133a   :  { %v1265_v51 = vpop.permute.xlu1 %1264 }
0x133b   :  { %v2263_v62 = vadd.f32 %v1265_v51, %v1257_v49 }
0x133d   :  { %1658 = vtanh.f32 %v2263_v62 }
0x1343   :  { %v1659_v0 = vpop.eup %1658 }
0x1344   :  { %1270 = vrot.lane.b32.xlu0 %v1659_v0, %s1778_s2 }
0x134e   :  { %v1359_v10 = vpop.permute.xlu0 %1358 }
0x134f   :  { %v1361_v35 = vadd.f32 %v1359_v10, %v1351_v9 }
0x1351   :  { %1660 = vtanh.f32 %v1361_v35 }
0x1357   :  { %v1661_v13 = vpop.eup %1660 }
0x1358   :  { %1364 = vrot.lane.b32.xlu2 %v1661_v13, %s1778_s2 }
0x13b2   :  { %v1365_v1 = vpop.permute.xlu2 %1364 }
0x13b3   :  { %v1367_v55 = vmul.f32 %v1365_v1, %v1347_v37 }
0x13b5   :  { %v1369_v54 = vrot.slane %v1367_v55, 7 }
0x13b6   :  { %v1271_v15 = vpop.permute.xlu0 %1270 }
0x13b7   :  { %v1273_v21 = vmul.f32 %v1271_v15, %v1256_v42  ;;  %1370 = vrot.lane.b32.xlu1 %v1369_v54, %s1776_s22 }
0x13b9   :  { %1279 = vrot.lane.b32.xlu2 %v1273_v21, %s1776_s22 }
0x1413   :  { %v1280_v56 = vpop.permute.xlu2 %1279 }
0x1414   :  { %1549 = vmatmul.msk.f32.vlgmr.msrb.gmra.mxu0 %vm125_vm1, %v1280_v56 }
0x1429   :  { %v1371_v50 = vpop.permute.xlu1 %1370 }
0x142a   :  { %1552 = vmatmul.msk.f32.vlgmr.msra.gmra.mxu2 %vm125_vm1, %v1371_v50 }
0x1491   :  { %v1300_v58 = vpop.f32.mrf.mxu0 }
0x1492   :  { %v1301_v53 = vadd.f32 %v2251_v61, %v1300_v58 }
0x14ad   :  { %v1391_v5 = vpop.f32.mrf.mxu2 }
0x14ae   :  { %v1394_v6 = vadd.f32 %v1391_v5, %v1301_v53 }
0x14b0   :  { %v1553_v57 = vmul.f32 -1.442695, %v1394_v6 }
0x14b2   :  { %1662 = vpow2.f32 %v1553_v57 }
0x14b8   :  { %v1663_v59 = vpop.eup %1662 }
0x14b9   :  { %v1398_v7 = vadd.f32 1.0, %v1663_v59 }
0x14bb   :  { %1664 = vrcp.f32 %v1398_v7  ;;  %v1410_v12 = vand.u32 2147483648, %v1398_v7  ;;  %v1408_v28 = vand.u32 2147483647, %v1398_v7  ;;  %vm1404_vm10 = vweird.f32 %v1398_v7 }
0x14bd   :  { %v1411_v18 = vor.u32 1.1754944e-38, %v1410_v12  ;;  %vm1409_vm11 = vcmp.eq.f32.partialorder %v1408_v28, 8.507059e+37 }
0x14c1   :  { %v1665_v60 = vpop.eup %1664 }
0x14c2   :  { %v1400_v11 = vmul.f32 %v1665_v60, %v1398_v7  ;;  %vm1405_vm9 = vweird.f32 %v1665_v60 }
0x14c3   :  { %vm1406_vm1 = vmor %vm1404_vm10, %vm1405_vm9 }
0x14c4   :  { %v1401_v63 = vsub.f32 1.0, %v1400_v11 }
0x14c6   :  { %v1402_v14 = vmul.f32 %v1665_v60, %v1401_v63 }
0x14c8   :  { %v1403_v16 = vadd.f32 %v1665_v60, %v1402_v14 }
0x14ca   :  { %v1407_v4 = vsel %vm1406_vm1, %v1665_v60, %v1403_v16 }
0x14cb   :  { %v1412_v61 = vsel %vm1409_vm11, %v1411_v18, %v1407_v4 }
0x14cc   :  { %v1414_v19 = vmul.f32 %v1412_v61, %v1933_v41 }
0x14ce   :  { %v1415_v20 = vadd.f32 %v1414_v19, %v1935_v44 }
0x14d0   :  { %1418 = vrot.lane.b32.xlu0 %v1415_v20, %s1778_s2  ;;  %v1416_v27 = vmul.f32 %v1415_v20, %v2263_v62 }
0x14d8   :  { %476 = vrot.lane.b32.xlu0 %v2092_v29, %s1778_s2 }
0x14e0   :  { %1275 = vrot.lane.b32.xlu0 %v1273_v21, %s1779_s7 }
0x14e8   :  { %1447 = vrot.lane.b32.xlu0 %v1361_v35, %s1779_s7 }
0x1542   :  { %v1419_v22 = vpop.permute.xlu0 %1418 }
0x1543   :  { %v1421_v23 = vmul.f32 %v1419_v22, %v1415_v20 }
0x1545   :  { %1423 = vrot.lane.b32.xlu1 %v1421_v23, %s1776_s22 }
0x154a   :  { %v477_v44 = vpop.permute.xlu0 %476 }
0x154b   :  { %482 = vst.msk [vmem:[#allocation5] sm:$0x1] %vm481_vm14, %v477_v44 }
0x154d   :  { %1116 = vrot.lane.b32.xlu1 %v2239_v3, %s1778_s2 }
0x1552   :  { %v1276_v29 = vpop.permute.xlu0 %1275 }
0x1555   :  { %1434 = vrot.lane.b32.xlu1 %v1367_v55, %s1776_s22 }
0x155a   :  { %v1448_v25 = vpop.permute.xlu0 %1447 }
0x155b   :  { %1450 = vst.msk [vmem:[#allocation8 - $0x7] sm:$0x80] %vm1437_vm15, %v1448_v25 }
0x15b7   :  { %v1424_v2 = vpop.permute.xlu1 %1423 }
0x15b8   :  { %v1426_v30 = vadd.f32 %v1424_v2, %v1416_v27 }
0x15ba   :  { %1666 = vtanh.f32 %v1426_v30  ;;  %1452 = vrot.lane.b32.xlu1 %v1426_v30, %s1779_s7 }
0x15bf   :  { %v1117_v32 = vpop.permute.xlu1 %1116 }
0x15c0   :  { %v1667_v8 = vpop.eup %1666  ;;  %1119 = vst.msk [vmem:[#allocation5 + $0x1] sm:$0x1] %vm481_vm14, %v1117_v32 }
0x15c1   :  { %1278 = vst.msk [vmem:[#allocation5 + $0x1] sm:$0x1] %vm643_vm3, %v1276_v29  ;;  %1429 = vrot.lane.b32.xlu2 %v1667_v8, %s1778_s2  ;;  %s1485_s2 = sshll.u32 %s1782_s24, 4  ;;  %s1486_s2 = int_to_ptr.vmem [resolvable:$true] %s1485_s2 }
0x15c7   :  { %v1435_v33 = vpop.permute.xlu1 %1434 }
0x15c8   :  { %1438 = vst.msk [vmem:[#allocation6 - $0x7] sm:$0x80] %vm1437_vm15, %v1435_v33 }
0x15c9   :  { %638 = vrot.lane.b32.xlu2 %v2132_v46, %s1779_s7 }
0x161b   :  { %v1430_v34 = vpop.permute.xlu2 %1429 }
0x161c   :  { %v1432_v36 = vmul.f32 %v1430_v34, %v1415_v20 }
0x161e   :  { %1440 = vrot.lane.b32.xlu2 %v1432_v36, %s1776_s22  ;;  %1433 = vst.msk [vmem:[#allocation5 + $0x1] sm:$0x1] %vm801_vm7, %v1432_v36 }
0x1623   :  { %v639_v37 = vpop.permute.xlu2 %638 }
0x1624   :  { %644 = vst.msk [vmem:[#allocation5] sm:$0x1] %vm643_vm3, %v639_v37 }
0x1625   :  { %802 = vst.msk [vmem:[#allocation5] sm:$0x1] %vm801_vm7, %v2172_v52 }
0x1626   :  { %1467 = dma.vmem_to_hbm [thread:$0]  %s1463_s18, 32, %s1465_s19, [#allocation4]  }
0x162c   :  { %v1453_v17 = vpop.permute.xlu1 %1452 }
0x162d   :  { %1456 = vst.msk [vmem:[#allocation8 + $0x1] sm:$0x1] %vm1444_vm8, %v1453_v17 }
0x1678   :  { %v1441_v46 = vpop.permute.xlu2 %1440 }
0x1679   :  { %1445 = vst.msk [vmem:[#allocation6 + $0x1] sm:$0x1] %vm1444_vm8, %v1441_v46 }
0x167a   :  { %1480 = dma.vmem_to_hbm [thread:$0]  %s1473_s21, 32, %s1475_s10, [#allocation7], %s1783_s27, %s1783_s27, %s1784_s28  }
0x167b   :  { %1493 = dma.vmem_to_hbm [thread:$0]  %s1486_s2, 32, %s1488_s26, [#allocation7], %s1783_s27, %s1783_s27, %s1784_s28  }
0x167c   :  { %1767 = dma.done.wait [#allocation4], 32  }
0x167d   :  { %1768 = vsyncadd [#allocation4], 4294967264 }
0x167e   :  { %1769 = dma.done.wait [#allocation7], 64  }
0x167f   :  { %1770 = vsyncadd [#allocation7], 4294967232 }
0x1680   :  { %1506 = vsyncpa [#allocation3], 1 }
0x1681   :  { %1507 = vsyncpa [#allocation4], 1 }
0x1682   :  { %1508 = vsyncpa [#allocation7], 1 }

</bundles_post_ra>
